<compile_context>
chip_gen: v6e
topology: v6e:2x2x1
jax: 0.10.0
libtpu: 0.0.40
codegen_flags: <defaults>
</compile_context>

<pallas_src>
import jax
import jax.numpy as jnp
from jax.experimental import pallas as pl
from jax.experimental.pallas import tpu as pltpu

LN_EPS = 1e-5  # PyTorch nn.LayerNorm default


def _round_up(n: int, m: int) -> int:
    return ((n + m - 1) // m) * m


def _pick_row_tile(n_rows: int, target: int = 1024, min_tile: int = 128,
                   min_blocks: int = 8) -> int:
    """Large tiles to amortize per-step overhead, shrunk only to keep enough
    grid blocks for megacore (v7x) load balance on small inputs."""
    tile = min(target, max(min_tile, _round_up(max(n_rows, 1), 8)))
    while tile > min_tile and pl.cdiv(n_rows, tile) < min_blocks:
        tile //= 2
    return max(_round_up(tile, 8), 8)


def _make_mlp_ln_kernel(num_linears: int):
    """Kernel body: (Linear+ReLU)*(L-1) -> Linear -> LayerNorm.

    Ref order: x_ref, w0, b0, ..., w_{L-1}, b_{L-1}, gamma, beta, o_ref.
    All feature dims are the exact logical widths (no padding, no masking).
    """

    def kernel(x_ref, *rest):
        o_ref = rest[-1]
        beta = rest[-2][...].astype(jnp.float32)    # (1, out_dim)
        gamma = rest[-3][...].astype(jnp.float32)   # (1, out_dim)

        h = x_ref[...]                              # native dtype into the MXU
        for li in range(num_linears):
            w = rest[2 * li][...]                   # (d_in, d_out)
            b = rest[2 * li + 1][...]               # (1, d_out)
            h = jnp.dot(h, w, preferred_element_type=jnp.float32)
            h = h + b.astype(jnp.float32)
            if li < num_linears - 1:
                h = jnp.maximum(h, 0.0)             # ReLU on hidden layers

        # LayerNorm over the (exact) last dim, fp32.
        mean = jnp.mean(h, axis=-1, keepdims=True)
        centered = h - mean
        var = jnp.mean(centered * centered, axis=-1, keepdims=True)
        out = centered * jax.lax.rsqrt(var + LN_EPS) * gamma + beta
        o_ref[...] = out.astype(o_ref.dtype)

    return kernel


def mlp_ln_pallas(x, weights, biases, gamma, beta, *, row_tile=None,
                  out_dtype=None):
    """MLP + LayerNorm over the rows of `x` in a single pipelined pallas_call."""
    n_rows, in_dim = x.shape
    out_dim = weights[-1].shape[1]
    num_linears = len(weights)
    if row_tile is None:
        row_tile = _pick_row_tile(n_rows)
    n_blocks = pl.cdiv(n_rows, row_tile)
    out_dtype = out_dtype or x.dtype

    # Input: streamed row blocks, exact (unpadded) feature width.
    in_specs = [pl.BlockSpec((row_tile, in_dim), lambda i: (i, 0))]
    operands = [x]

    # Parameters: full-resident blocks, constant index_map -> fetched once.
    for w, b in zip(weights, biases):
        b2 = b.reshape(1, -1)
        in_specs.append(pl.BlockSpec(w.shape, lambda i: (0, 0)))
        operands.append(w)
        in_specs.append(pl.BlockSpec(b2.shape, lambda i: (0, 0)))
        operands.append(b2)
    g2 = gamma.reshape(1, -1)
    bt2 = beta.reshape(1, -1)
    in_specs.append(pl.BlockSpec(g2.shape, lambda i: (0, 0)))
    operands.append(g2)
    in_specs.append(pl.BlockSpec(bt2.shape, lambda i: (0, 0)))
    operands.append(bt2)

    out_spec = pl.BlockSpec((row_tile, out_dim), lambda i: (i, 0))

    return pl.pallas_call(
        _make_mlp_ln_kernel(num_linears),
        out_shape=jax.ShapeDtypeStruct((n_rows, out_dim), out_dtype),
        grid_spec=pltpu.PrefetchScalarGridSpec(
            num_scalar_prefetch=0,
            grid=(n_blocks,),
            in_specs=in_specs,
            out_specs=out_spec,
        ),
        compiler_params=pltpu.CompilerParams(
            dimension_semantics=("parallel",),   # row blocks independent
            vmem_limit_bytes=32 << 20,           # safe on v5e/v6e/v7x
        ),
    )(*operands)


def _encoder_forward(node_params, edge_params, x, e_features):
    nw, nb, ng, nbt = node_params
    ew, eb, eg, ebt = edge_params
    node_out = mlp_ln_pallas(x, nw, nb, ng, nbt)
    edge_out = mlp_ln_pallas(e_features, ew, eb, eg, ebt)
    return node_out, edge_out


def init_mlp_ln_params(key, in_dim, hidden_list, out_dim):
    """Deterministic parameter init (shapes match nn.Linear / nn.LayerNorm)."""
    dims = [in_dim] + list(hidden_list) + [out_dim]
    weights, biases = [], []
    for i in range(len(dims) - 1):
        key, wk, bk = jax.random.split(key, 3)
        bound = 1.0 / jnp.sqrt(dims[i])
        w = jax.random.uniform(wk, (dims[i], dims[i + 1]), jnp.float32,
                               minval=-bound, maxval=bound)
        b = jax.random.uniform(bk, (1, dims[i + 1]), jnp.float32,
                               minval=-bound, maxval=bound)
        weights.append(w)
        biases.append(b)
    gamma = jnp.ones((1, out_dim), jnp.float32)   # LayerNorm weight
    beta = jnp.zeros((1, out_dim), jnp.float32)   # LayerNorm bias
    return weights, biases, gamma, beta


class EncoderPallas:
    """JAX/Pallas equivalent of the PyTorch Encoder module."""

    def __init__(self, key, node_in, node_out, edge_in, edge_out,
                 mlp_layers, mlp_hidden):
        k_node, k_edge = jax.random.split(key)
        hidden = [mlp_hidden] * mlp_layers
        # Parameters are kept in kernel-ready layout (built once, reused).
        self.node_params = init_mlp_ln_params(k_node, node_in, hidden, node_out)
        self.edge_params = init_mlp_ln_params(k_edge, edge_in, hidden, edge_out)
        # jit so repeated calls at the same shapes re-use the compiled program.
        self._forward = jax.jit(_encoder_forward)

    def __call__(self, x, edge_index, e_features):
        del edge_index  # unused by the reference forward pass
        return self._forward(self.node_params, self.edge_params, x, e_features)


def _reference_mlp_ln(x, params):
    weights, biases, gamma, beta = params
    h = x
    for i, (w, b) in enumerate(zip(weights, biases)):
        h = h @ w + b
        if i < len(weights) - 1:
            h = jnp.maximum(h, 0.0)
    mean = jnp.mean(h, axis=-1, keepdims=True)
    var = jnp.mean((h - mean) ** 2, axis=-1, keepdims=True)
    return (h - mean) / jnp.sqrt(var + LN_EPS) * gamma + beta


if __name__ == "__main__":
    # Small, shape-consistent example sizes.
    node_in, node_out = 16, 32
    edge_in, edge_out = 12, 32
    mlp_layers, mlp_hidden = 2, 32
    num_nodes, num_edges = 64, 128

    key = jax.random.PRNGKey(0)
    k_params, k_x, k_e, k_idx = jax.random.split(key, 4)

    enc = EncoderPallas(k_params, node_in, node_out, edge_in, edge_out,
                        mlp_layers, mlp_hidden)

    x = jax.random.normal(k_x, (num_nodes, node_in), jnp.float32)
    e_features = jax.random.normal(k_e, (num_edges, edge_in), jnp.float32)
    edge_index = jax.random.randint(k_idx, (2, num_edges), 0, num_nodes)

    node_o, edge_o = enc(x, edge_index, e_features)
    node_o = jax.block_until_ready(node_o)
    edge_o = jax.block_until_ready(edge_o)

    # Sanity check against a plain-JAX reference of the same math.
    ref_node = _reference_mlp_ln(x, enc.node_params)
    ref_edge = _reference_mlp_ln(e_features, enc.edge_params)
    assert node_o.shape == (num_nodes, node_out)
    assert edge_o.shape == (num_edges, edge_out)
    assert jnp.allclose(node_o, ref_node, atol=1e-4, rtol=1e-4)
    assert jnp.allclose(edge_o, ref_edge, atol=1e-4, rtol=1e-4)

    print("KERNEL_OK")
</pallas_src>

<mosaic_0001>
module attributes {stable_mosaic.version = 11 : i64} {
  func.func @kernel(%arg0: i32, %arg1: memref<128x12xf32, #tpu.memory_space<vmem>>, %arg2: memref<12x32xf32, #tpu.memory_space<vmem>>, %arg3: memref<1x32xf32, #tpu.memory_space<vmem>>, %arg4: memref<32x32xf32, #tpu.memory_space<vmem>>, %arg5: memref<1x32xf32, #tpu.memory_space<vmem>>, %arg6: memref<32x32xf32, #tpu.memory_space<vmem>>, %arg7: memref<1x32xf32, #tpu.memory_space<vmem>>, %arg8: memref<1x32xf32, #tpu.memory_space<vmem>>, %arg9: memref<1x32xf32, #tpu.memory_space<vmem>>, %arg10: memref<128x32xf32, #tpu.memory_space<vmem>>) attributes {dimension_semantics = [#tpu.dimension_semantics<parallel>], iteration_bounds = array<i64: 1>, scalar_prefetch = 0 : i64, scratch_operands = 0 : i64, tpu.core_type = #tpu.core_type<tc>, window_params = [{transform_indices = @transform_0, window_bounds = array<i64: 128, 12>}, {pipeline_mode = #tpu.pipeline_mode<synchronous>, transform_indices = @transform_1, window_bounds = array<i64: 12, 32>}, {pipeline_mode = #tpu.pipeline_mode<synchronous>, transform_indices = @transform_2, window_bounds = array<i64: 1, 32>}, {pipeline_mode = #tpu.pipeline_mode<synchronous>, transform_indices = @transform_3, window_bounds = array<i64: 32, 32>}, {pipeline_mode = #tpu.pipeline_mode<synchronous>, transform_indices = @transform_4, window_bounds = array<i64: 1, 32>}, {pipeline_mode = #tpu.pipeline_mode<synchronous>, transform_indices = @transform_5, window_bounds = array<i64: 32, 32>}, {pipeline_mode = #tpu.pipeline_mode<synchronous>, transform_indices = @transform_6, window_bounds = array<i64: 1, 32>}, {pipeline_mode = #tpu.pipeline_mode<synchronous>, transform_indices = @transform_7, window_bounds = array<i64: 1, 32>}, {pipeline_mode = #tpu.pipeline_mode<synchronous>, transform_indices = @transform_8, window_bounds = array<i64: 1, 32>}, {transform_indices = @transform_9, window_bounds = array<i64: 128, 32>}]} {
    %c0 = arith.constant 0 : index
    %c0_0 = arith.constant 0 : index
    %0 = vector.load %arg9[%c0, %c0_0] : memref<1x32xf32, #tpu.memory_space<vmem>>, vector<1x32xf32>
    %c0_1 = arith.constant 0 : index
    %c0_2 = arith.constant 0 : index
    %1 = vector.load %arg8[%c0_1, %c0_2] : memref<1x32xf32, #tpu.memory_space<vmem>>, vector<1x32xf32>
    %c0_3 = arith.constant 0 : index
    %c0_4 = arith.constant 0 : index
    %2 = vector.load %arg1[%c0_3, %c0_4] : memref<128x12xf32, #tpu.memory_space<vmem>>, vector<128x12xf32>
    %c0_5 = arith.constant 0 : index
    %c0_6 = arith.constant 0 : index
    %3 = vector.load %arg2[%c0_5, %c0_6] : memref<12x32xf32, #tpu.memory_space<vmem>>, vector<12x32xf32>
    %c0_7 = arith.constant 0 : index
    %c0_8 = arith.constant 0 : index
    %4 = vector.load %arg3[%c0_7, %c0_8] : memref<1x32xf32, #tpu.memory_space<vmem>>, vector<1x32xf32>
    %cst = arith.constant dense<0.000000e+00> : vector<128x32xf32>
    %5 = tpu.matmul %2, %3, %cst {dimension_numbers = #tpu.dot_dimension_numbers<[1], [0], [0], [1], [0, 0, 1, 1], [], []>} : vector<128x12xf32>, vector<12x32xf32>, vector<128x32xf32> -> vector<128x32xf32>
    %6 = vector.broadcast %4 : vector<1x32xf32> to vector<128x32xf32>
    %7 = arith.addf %5, %6 : vector<128x32xf32>
    %cst_9 = arith.constant 0.000000e+00 : f32
    %8 = vector.broadcast %cst_9 : f32 to vector<128x32xf32>
    %9 = arith.maximumf %7, %8 : vector<128x32xf32>
    %c0_10 = arith.constant 0 : index
    %c0_11 = arith.constant 0 : index
    %10 = vector.load %arg4[%c0_10, %c0_11] : memref<32x32xf32, #tpu.memory_space<vmem>>, vector<32x32xf32>
    %c0_12 = arith.constant 0 : index
    %c0_13 = arith.constant 0 : index
    %11 = vector.load %arg5[%c0_12, %c0_13] : memref<1x32xf32, #tpu.memory_space<vmem>>, vector<1x32xf32>
    %cst_14 = arith.constant dense<0.000000e+00> : vector<128x32xf32>
    %12 = tpu.matmul %9, %10, %cst_14 {dimension_numbers = #tpu.dot_dimension_numbers<[1], [0], [0], [1], [0, 0, 1, 1], [], []>} : vector<128x32xf32>, vector<32x32xf32>, vector<128x32xf32> -> vector<128x32xf32>
    %13 = vector.broadcast %11 : vector<1x32xf32> to vector<128x32xf32>
    %14 = arith.addf %12, %13 : vector<128x32xf32>
    %cst_15 = arith.constant 0.000000e+00 : f32
    %15 = vector.broadcast %cst_15 : f32 to vector<128x32xf32>
    %16 = arith.maximumf %14, %15 : vector<128x32xf32>
    %c0_16 = arith.constant 0 : index
    %c0_17 = arith.constant 0 : index
    %17 = vector.load %arg6[%c0_16, %c0_17] : memref<32x32xf32, #tpu.memory_space<vmem>>, vector<32x32xf32>
    %c0_18 = arith.constant 0 : index
    %c0_19 = arith.constant 0 : index
    %18 = vector.load %arg7[%c0_18, %c0_19] : memref<1x32xf32, #tpu.memory_space<vmem>>, vector<1x32xf32>
    %cst_20 = arith.constant dense<0.000000e+00> : vector<128x32xf32>
    %19 = tpu.matmul %16, %17, %cst_20 {dimension_numbers = #tpu.dot_dimension_numbers<[1], [0], [0], [1], [0, 0, 1, 1], [], []>} : vector<128x32xf32>, vector<32x32xf32>, vector<128x32xf32> -> vector<128x32xf32>
    %20 = vector.broadcast %18 : vector<1x32xf32> to vector<128x32xf32>
    %21 = arith.addf %19, %20 : vector<128x32xf32>
    %cst_21 = arith.constant dense<0.000000e+00> : vector<128xf32>
    %22 = vector.multi_reduction <add>, %21, %cst_21 [1] : vector<128x32xf32> to vector<128xf32>
    %23 = vector.shape_cast %22 : vector<128xf32> to vector<128x1xf32>
    %cst_22 = arith.constant 3.200000e+01 : f32
    %24 = vector.broadcast %cst_22 : f32 to vector<128x1xf32>
    %25 = arith.divf %23, %24 : vector<128x1xf32>
    %26 = vector.broadcast %25 : vector<128x1xf32> to vector<128x32xf32>
    %27 = arith.subf %21, %26 : vector<128x32xf32>
    %28 = arith.mulf %27, %27 : vector<128x32xf32>
    %cst_23 = arith.constant dense<0.000000e+00> : vector<128xf32>
    %29 = vector.multi_reduction <add>, %28, %cst_23 [1] : vector<128x32xf32> to vector<128xf32>
    %30 = vector.shape_cast %29 : vector<128xf32> to vector<128x1xf32>
    %cst_24 = arith.constant 3.200000e+01 : f32
    %31 = vector.broadcast %cst_24 : f32 to vector<128x1xf32>
    %32 = arith.divf %30, %31 : vector<128x1xf32>
    %cst_25 = arith.constant 9.99999974E-6 : f32
    %33 = vector.broadcast %cst_25 : f32 to vector<128x1xf32>
    %34 = arith.addf %32, %33 : vector<128x1xf32>
    %35 = math.rsqrt %34 : vector<128x1xf32>
    %36 = vector.broadcast %35 : vector<128x1xf32> to vector<128x32xf32>
    %37 = arith.mulf %27, %36 : vector<128x32xf32>
    %38 = vector.broadcast %1 : vector<1x32xf32> to vector<128x32xf32>
    %39 = arith.mulf %37, %38 : vector<128x32xf32>
    %40 = vector.broadcast %0 : vector<1x32xf32> to vector<128x32xf32>
    %41 = arith.addf %39, %40 : vector<128x32xf32>
    %c0_26 = arith.constant 0 : index
    %c0_27 = arith.constant 0 : index
    %42 = vector.load %arg10[%c0_26, %c0_27] : memref<128x32xf32, #tpu.memory_space<vmem>>, vector<128x32xf32>
    tpu.vector_store %arg10[%c0_26, %c0_27], %41 {strides = array<i32>} : memref<128x32xf32, #tpu.memory_space<vmem>>, vector<128x32xf32>,
    return
  }
  func.func @transform_0(%arg0: i32) -> (i32, i32) {
    %c0_i32 = arith.constant 0 : i32
    %c0_i32_0 = arith.constant 0 : i32
    return %arg0, %c0_i32 : i32, i32
  }
  func.func @transform_1(%arg0: i32) -> (i32, i32) {
    %c0_i32 = arith.constant 0 : i32
    %c0_i32_0 = arith.constant 0 : i32
    %c0_i32_1 = arith.constant 0 : i32
    return %c0_i32, %c0_i32_0 : i32, i32
  }
  func.func @transform_2(%arg0: i32) -> (i32, i32) {
    %c0_i32 = arith.constant 0 : i32
    %c0_i32_0 = arith.constant 0 : i32
    %c0_i32_1 = arith.constant 0 : i32
    return %c0_i32, %c0_i32_0 : i32, i32
  }
  func.func @transform_3(%arg0: i32) -> (i32, i32) {
    %c0_i32 = arith.constant 0 : i32
    %c0_i32_0 = arith.constant 0 : i32
    %c0_i32_1 = arith.constant 0 : i32
    return %c0_i32, %c0_i32_0 : i32, i32
  }
  func.func @transform_4(%arg0: i32) -> (i32, i32) {
    %c0_i32 = arith.constant 0 : i32
    %c0_i32_0 = arith.constant 0 : i32
    %c0_i32_1 = arith.constant 0 : i32
    return %c0_i32, %c0_i32_0 : i32, i32
  }
  func.func @transform_5(%arg0: i32) -> (i32, i32) {
    %c0_i32 = arith.constant 0 : i32
    %c0_i32_0 = arith.constant 0 : i32
    %c0_i32_1 = arith.constant 0 : i32
    return %c0_i32, %c0_i32_0 : i32, i32
  }
  func.func @transform_6(%arg0: i32) -> (i32, i32) {
    %c0_i32 = arith.constant 0 : i32
    %c0_i32_0 = arith.constant 0 : i32
    %c0_i32_1 = arith.constant 0 : i32
    return %c0_i32, %c0_i32_0 : i32, i32
  }
  func.func @transform_7(%arg0: i32) -> (i32, i32) {
    %c0_i32 = arith.constant 0 : i32
    %c0_i32_0 = arith.constant 0 : i32
    %c0_i32_1 = arith.constant 0 : i32
    return %c0_i32, %c0_i32_0 : i32, i32
  }
  func.func @transform_8(%arg0: i32) -> (i32, i32) {
    %c0_i32 = arith.constant 0 : i32
    %c0_i32_0 = arith.constant 0 : i32
    %c0_i32_1 = arith.constant 0 : i32
    return %c0_i32, %c0_i32_0 : i32, i32
  }
  func.func @transform_9(%arg0: i32) -> (i32, i32) {
    %c0_i32 = arith.constant 0 : i32
    %c0_i32_0 = arith.constant 0 : i32
    return %arg0, %c0_i32 : i32, i32
  }
}

module attributes {stable_mosaic.version = 11 : i64} {
  func.func @kernel(%arg0: i32, %arg1: memref<128x16xf32, #tpu.memory_space<vmem>>, %arg2: memref<16x32xf32, #tpu.memory_space<vmem>>, %arg3: memref<1x32xf32, #tpu.memory_space<vmem>>, %arg4: memref<32x32xf32, #tpu.memory_space<vmem>>, %arg5: memref<1x32xf32, #tpu.memory_space<vmem>>, %arg6: memref<32x32xf32, #tpu.memory_space<vmem>>, %arg7: memref<1x32xf32, #tpu.memory_space<vmem>>, %arg8: memref<1x32xf32, #tpu.memory_space<vmem>>, %arg9: memref<1x32xf32, #tpu.memory_space<vmem>>, %arg10: memref<128x32xf32, #tpu.memory_space<vmem>>) attributes {dimension_semantics = [#tpu.dimension_semantics<parallel>], iteration_bounds = array<i64: 1>, scalar_prefetch = 0 : i64, scratch_operands = 0 : i64, tpu.core_type = #tpu.core_type<tc>, window_params = [{transform_indices = @transform_0, window_bounds = array<i64: 128, 16>}, {pipeline_mode = #tpu.pipeline_mode<synchronous>, transform_indices = @transform_1, window_bounds = array<i64: 16, 32>}, {pipeline_mode = #tpu.pipeline_mode<synchronous>, transform_indices = @transform_2, window_bounds = array<i64: 1, 32>}, {pipeline_mode = #tpu.pipeline_mode<synchronous>, transform_indices = @transform_3, window_bounds = array<i64: 32, 32>}, {pipeline_mode = #tpu.pipeline_mode<synchronous>, transform_indices = @transform_4, window_bounds = array<i64: 1, 32>}, {pipeline_mode = #tpu.pipeline_mode<synchronous>, transform_indices = @transform_5, window_bounds = array<i64: 32, 32>}, {pipeline_mode = #tpu.pipeline_mode<synchronous>, transform_indices = @transform_6, window_bounds = array<i64: 1, 32>}, {pipeline_mode = #tpu.pipeline_mode<synchronous>, transform_indices = @transform_7, window_bounds = array<i64: 1, 32>}, {pipeline_mode = #tpu.pipeline_mode<synchronous>, transform_indices = @transform_8, window_bounds = array<i64: 1, 32>}, {transform_indices = @transform_9, window_bounds = array<i64: 128, 32>}]} {
    %c0 = arith.constant 0 : index
    %c0_0 = arith.constant 0 : index
    %0 = vector.load %arg9[%c0, %c0_0] : memref<1x32xf32, #tpu.memory_space<vmem>>, vector<1x32xf32>
    %c0_1 = arith.constant 0 : index
    %c0_2 = arith.constant 0 : index
    %1 = vector.load %arg8[%c0_1, %c0_2] : memref<1x32xf32, #tpu.memory_space<vmem>>, vector<1x32xf32>
    %c0_3 = arith.constant 0 : index
    %c0_4 = arith.constant 0 : index
    %2 = vector.load %arg1[%c0_3, %c0_4] : memref<128x16xf32, #tpu.memory_space<vmem>>, vector<128x16xf32>
    %c0_5 = arith.constant 0 : index
    %c0_6 = arith.constant 0 : index
    %3 = vector.load %arg2[%c0_5, %c0_6] : memref<16x32xf32, #tpu.memory_space<vmem>>, vector<16x32xf32>
    %c0_7 = arith.constant 0 : index
    %c0_8 = arith.constant 0 : index
    %4 = vector.load %arg3[%c0_7, %c0_8] : memref<1x32xf32, #tpu.memory_space<vmem>>, vector<1x32xf32>
    %cst = arith.constant dense<0.000000e+00> : vector<128x32xf32>
    %5 = tpu.matmul %2, %3, %cst {dimension_numbers = #tpu.dot_dimension_numbers<[1], [0], [0], [1], [0, 0, 1, 1], [], []>} : vector<128x16xf32>, vector<16x32xf32>, vector<128x32xf32> -> vector<128x32xf32>
    %6 = vector.broadcast %4 : vector<1x32xf32> to vector<128x32xf32>
    %7 = arith.addf %5, %6 : vector<128x32xf32>
    %cst_9 = arith.constant 0.000000e+00 : f32
    %8 = vector.broadcast %cst_9 : f32 to vector<128x32xf32>
    %9 = arith.maximumf %7, %8 : vector<128x32xf32>
    %c0_10 = arith.constant 0 : index
    %c0_11 = arith.constant 0 : index
    %10 = vector.load %arg4[%c0_10, %c0_11] : memref<32x32xf32, #tpu.memory_space<vmem>>, vector<32x32xf32>
    %c0_12 = arith.constant 0 : index
    %c0_13 = arith.constant 0 : index
    %11 = vector.load %arg5[%c0_12, %c0_13] : memref<1x32xf32, #tpu.memory_space<vmem>>, vector<1x32xf32>
    %cst_14 = arith.constant dense<0.000000e+00> : vector<128x32xf32>
    %12 = tpu.matmul %9, %10, %cst_14 {dimension_numbers = #tpu.dot_dimension_numbers<[1], [0], [0], [1], [0, 0, 1, 1], [], []>} : vector<128x32xf32>, vector<32x32xf32>, vector<128x32xf32> -> vector<128x32xf32>
    %13 = vector.broadcast %11 : vector<1x32xf32> to vector<128x32xf32>
    %14 = arith.addf %12, %13 : vector<128x32xf32>
    %cst_15 = arith.constant 0.000000e+00 : f32
    %15 = vector.broadcast %cst_15 : f32 to vector<128x32xf32>
    %16 = arith.maximumf %14, %15 : vector<128x32xf32>
    %c0_16 = arith.constant 0 : index
    %c0_17 = arith.constant 0 : index
    %17 = vector.load %arg6[%c0_16, %c0_17] : memref<32x32xf32, #tpu.memory_space<vmem>>, vector<32x32xf32>
    %c0_18 = arith.constant 0 : index
    %c0_19 = arith.constant 0 : index
    %18 = vector.load %arg7[%c0_18, %c0_19] : memref<1x32xf32, #tpu.memory_space<vmem>>, vector<1x32xf32>
    %cst_20 = arith.constant dense<0.000000e+00> : vector<128x32xf32>
    %19 = tpu.matmul %16, %17, %cst_20 {dimension_numbers = #tpu.dot_dimension_numbers<[1], [0], [0], [1], [0, 0, 1, 1], [], []>} : vector<128x32xf32>, vector<32x32xf32>, vector<128x32xf32> -> vector<128x32xf32>
    %20 = vector.broadcast %18 : vector<1x32xf32> to vector<128x32xf32>
    %21 = arith.addf %19, %20 : vector<128x32xf32>
    %cst_21 = arith.constant dense<0.000000e+00> : vector<128xf32>
    %22 = vector.multi_reduction <add>, %21, %cst_21 [1] : vector<128x32xf32> to vector<128xf32>
    %23 = vector.shape_cast %22 : vector<128xf32> to vector<128x1xf32>
    %cst_22 = arith.constant 3.200000e+01 : f32
    %24 = vector.broadcast %cst_22 : f32 to vector<128x1xf32>
    %25 = arith.divf %23, %24 : vector<128x1xf32>
    %26 = vector.broadcast %25 : vector<128x1xf32> to vector<128x32xf32>
    %27 = arith.subf %21, %26 : vector<128x32xf32>
    %28 = arith.mulf %27, %27 : vector<128x32xf32>
    %cst_23 = arith.constant dense<0.000000e+00> : vector<128xf32>
    %29 = vector.multi_reduction <add>, %28, %cst_23 [1] : vector<128x32xf32> to vector<128xf32>
    %30 = vector.shape_cast %29 : vector<128xf32> to vector<128x1xf32>
    %cst_24 = arith.constant 3.200000e+01 : f32
    %31 = vector.broadcast %cst_24 : f32 to vector<128x1xf32>
    %32 = arith.divf %30, %31 : vector<128x1xf32>
    %cst_25 = arith.constant 9.99999974E-6 : f32
    %33 = vector.broadcast %cst_25 : f32 to vector<128x1xf32>
    %34 = arith.addf %32, %33 : vector<128x1xf32>
    %35 = math.rsqrt %34 : vector<128x1xf32>
    %36 = vector.broadcast %35 : vector<128x1xf32> to vector<128x32xf32>
    %37 = arith.mulf %27, %36 : vector<128x32xf32>
    %38 = vector.broadcast %1 : vector<1x32xf32> to vector<128x32xf32>
    %39 = arith.mulf %37, %38 : vector<128x32xf32>
    %40 = vector.broadcast %0 : vector<1x32xf32> to vector<128x32xf32>
    %41 = arith.addf %39, %40 : vector<128x32xf32>
    %c0_26 = arith.constant 0 : index
    %c0_27 = arith.constant 0 : index
    %42 = vector.load %arg10[%c0_26, %c0_27] : memref<128x32xf32, #tpu.memory_space<vmem>>, vector<128x32xf32>
    tpu.vector_store %arg10[%c0_26, %c0_27], %41 {strides = array<i32>} : memref<128x32xf32, #tpu.memory_space<vmem>>, vector<128x32xf32>,
    return
  }
  func.func @transform_0(%arg0: i32) -> (i32, i32) {
    %c0_i32 = arith.constant 0 : i32
    %c0_i32_0 = arith.constant 0 : i32
    return %arg0, %c0_i32 : i32, i32
  }
  func.func @transform_1(%arg0: i32) -> (i32, i32) {
    %c0_i32 = arith.constant 0 : i32
    %c0_i32_0 = arith.constant 0 : i32
    %c0_i32_1 = arith.constant 0 : i32
    return %c0_i32, %c0_i32_0 : i32, i32
  }
  func.func @transform_2(%arg0: i32) -> (i32, i32) {
    %c0_i32 = arith.constant 0 : i32
    %c0_i32_0 = arith.constant 0 : i32
    %c0_i32_1 = arith.constant 0 : i32
    return %c0_i32, %c0_i32_0 : i32, i32
  }
  func.func @transform_3(%arg0: i32) -> (i32, i32) {
    %c0_i32 = arith.constant 0 : i32
    %c0_i32_0 = arith.constant 0 : i32
    %c0_i32_1 = arith.constant 0 : i32
    return %c0_i32, %c0_i32_0 : i32, i32
  }
  func.func @transform_4(%arg0: i32) -> (i32, i32) {
    %c0_i32 = arith.constant 0 : i32
    %c0_i32_0 = arith.constant 0 : i32
    %c0_i32_1 = arith.constant 0 : i32
    return %c0_i32, %c0_i32_0 : i32, i32
  }
  func.func @transform_5(%arg0: i32) -> (i32, i32) {
    %c0_i32 = arith.constant 0 : i32
    %c0_i32_0 = arith.constant 0 : i32
    %c0_i32_1 = arith.constant 0 : i32
    return %c0_i32, %c0_i32_0 : i32, i32
  }
  func.func @transform_6(%arg0: i32) -> (i32, i32) {
    %c0_i32 = arith.constant 0 : i32
    %c0_i32_0 = arith.constant 0 : i32
    %c0_i32_1 = arith.constant 0 : i32
    return %c0_i32, %c0_i32_0 : i32, i32
  }
  func.func @transform_7(%arg0: i32) -> (i32, i32) {
    %c0_i32 = arith.constant 0 : i32
    %c0_i32_0 = arith.constant 0 : i32
    %c0_i32_1 = arith.constant 0 : i32
    return %c0_i32, %c0_i32_0 : i32, i32
  }
  func.func @transform_8(%arg0: i32) -> (i32, i32) {
    %c0_i32 = arith.constant 0 : i32
    %c0_i32_0 = arith.constant 0 : i32
    %c0_i32_1 = arith.constant 0 : i32
    return %c0_i32, %c0_i32_0 : i32, i32
  }
  func.func @transform_9(%arg0: i32) -> (i32, i32) {
    %c0_i32 = arith.constant 0 : i32
    %c0_i32_0 = arith.constant 0 : i32
    return %arg0, %c0_i32 : i32, i32
  }
}

</mosaic_0001>

<bundles_post_ra>
// kernel: _encoder_forward.2
= control target key start
LH: loop header
LB: loop body
LE: loop exit
PB: predicated region body
PF: predicated region fallthrough
CT: control target
= control target key end

     0   :  { %vm59_vm0 = vcmask 130048   ;;  %vm280_vm1 = vcmask 261120   ;;  %s1650_s0 = inlined_call_operand.vmem [shape: f32[64,16], index: 0, kind: input, shape index: {}]   ;;  %s1651_s1 = inlined_call_operand.vmem [shape: f32[16,32], index: 1, kind: input, shape index: {}]   ;;  %s1652_s2 = inlined_call_operand.vmem [shape: f32[1,32], index: 2, kind: input, shape index: {}]   ;;  %s1653_s3 = inlined_call_operand.vmem [shape: f32[32,32], index: 3, kind: input, shape index: {}]   ;;  %s1654_s4 = inlined_call_operand.vmem [shape: f32[1,32], index: 4, kind: input, shape index: {}]   ;;  %s1655_s5 = inlined_call_operand.vmem [shape: f32[32,32], index: 5, kind: input, shape index: {}]   ;;  %s1656_s6 = inlined_call_operand.vmem [shape: f32[1,32], index: 6, kind: input, shape index: {}]   ;;  %s1657_s7 = inlined_call_operand.vmem [shape: f32[1,32], index: 7, kind: input, shape index: {}]   ;;  %s1658_s8 = inlined_call_operand.vmem [shape: f32[1,32], index: 8, kind: input, shape index: {}]   ;;  %s1659_s9 = inlined_call_operand.vmem [shape: f32[64,32], index: 9, kind: output, shape index: {}]  }
   0x1   :  { %v51_v0 = vld [vmem:[%s1651_s1 + $0x8] sm:$0xff]  ;;  %v50_v1 = vld [vmem:[%s1651_s1] sm:$0xff]  ;;  %v36_v4 = vld [vmem:[%s1650_s0 + $0x10] sm:$0xff] }
   0x2   :  { %v34_v2 = vld [vmem:[%s1650_s0] sm:$0xff]  ;;  %1143 = vmatprep.subr.mxu0 %v51_v0  ;;  %v35_v3 = vld [vmem:[%s1650_s0 + $0x8] sm:$0xff]  ;;  %1235 = vmatprep.subr.mxu1 %v51_v0  ;;  %v44_v7 = vld [vmem:[%s1650_s0 + $0x50] sm:$0xff] }
   0x3   :  { %1147 = vmatprep.mubr.msk.f32.mxu0 %vm59_vm0, %v34_v2  ;;  %1144 = vmatpush3.msra.mxu0 %v51_v0  ;;  %v42_v5 = vld [vmem:[%s1650_s0 + $0x40] sm:$0xff]  ;;  %v43_v6 = vld [vmem:[%s1650_s0 + $0x48] sm:$0xff]  ;;  %v37_v8 = vld [vmem:[%s1650_s0 + $0x18] sm:$0xff] }
   0x4   :  { %1145 = vmatprep.subr.mxu0 %v50_v1  ;;  %1237 = vmatpush3.msra.mxu1 %v51_v0  ;;  %v272_v9 = vld [vmem:[%s1653_s3 + $0x18] sm:$0xff]  ;;  %v271_v10 = vld [vmem:[%s1653_s3 + $0x10] sm:$0xff]  ;;  %v38_v11 = vld [vmem:[%s1650_s0 + $0x20] sm:$0xff] }
   0x5   :  { %1146 = vmatpush3.msra.mxu0 %v50_v1  ;;  %1236 = vmatprep.subr.mxu1 %v50_v1  ;;  %v45_v12 = vld [vmem:[%s1650_s0 + $0x58] sm:$0xff]  ;;  %v270_v13 = vld [vmem:[%s1653_s3 + $0x8] sm:$0xff]  ;;  %v46_v14 = vld [vmem:[%s1650_s0 + $0x60] sm:$0xff] }
   0x6   :  { %1148 = vmatmul.mubr.msk.f32.vlgmr.msra.gmra.mxu0 %vm59_vm0, %v35_v3  ;;  %1238 = vmatpush3.msra.mxu1 %v50_v1  ;;  %v39_v15 = vld [vmem:[%s1650_s0 + $0x28] sm:$0xff]  ;;  %v40_v16 = vld [vmem:[%s1650_s0 + $0x30] sm:$0xff]  ;;  %v41_v19 = vld [vmem:[%s1650_s0 + $0x38] sm:$0xff] }
   0x7   :  { %1150 = vmatprep.mubr.msk.f32.mxu0 %vm59_vm0, %v36_v4  ;;  %1159 = vmatprep.mubr.msk.f32.mxu1 %vm59_vm0, %v42_v5  ;;  %v47_v17 = vld [vmem:[%s1650_s0 + $0x68] sm:$0xff]  ;;  %v48_v18 = vld [vmem:[%s1650_s0 + $0x70] sm:$0xff]  ;;  %v49_v20 = vld [vmem:[%s1650_s0 + $0x78] sm:$0xff] }
   0x8   :  { %1160 = vmatmul.mubr.msk.f32.vlgmr.msra.gmra.mxu1 %vm59_vm0, %v43_v6  ;;  %1171 = vmatprep.subr.mxu1 %v272_v9  ;;  %v269_v21 = vld [vmem:[%s1653_s3] sm:$0xff]  ;;  %v493_v22 = vld [vmem:[%s1655_s5 + $0x18] sm:$0xff]  ;;  %v492_v23 = vld [vmem:[%s1655_s5 + $0x10] sm:$0xff] }
   0x9   :  { %1162 = vmatprep.mubr.msk.f32.mxu1 %vm59_vm0, %v44_v7  ;;  %1172 = vmatpush3.msra.mxu1 %v272_v9  ;;  %v491_v24 = vld [vmem:[%s1655_s5 + $0x8] sm:$0xff]  ;;  %v1032_v25 = vld [vmem:[%s1652_s2] ss:$0 sm:$0xff] }
   0xa   :  { %1151 = vmatmul.mubr.msk.f32.gmra.mxu0 %vm59_vm0, %v37_v8  ;;  %1173 = vmatprep.subr.mxu1 %v271_v10 }
   0xb   :  { %1153 = vmatprep.mubr.msk.f32.mxu0 %vm59_vm0, %v38_v11  ;;  %1174 = vmatpush3.msra.mxu1 %v271_v10  ;;  %v490_v10 = vld [vmem:[%s1655_s5] sm:$0xff] }
   0xc   :  { %1163 = vmatmul.mubr.msk.f32.gmra.mxu1 %vm59_vm0, %v45_v12  ;;  %1175 = vmatprep.subr.mxu1 %v270_v13  ;;  %v1049_v11 = vld [vmem:[%s1654_s4] ss:$0 sm:$0xff] }
   0xd   :  { %1165 = vmatprep.mubr.msk.f32.mxu1 %vm59_vm0, %v46_v14  ;;  %1176 = vmatpush3.msra.mxu1 %v270_v13 }
   0xe   :  { %1154 = vmatmul.mubr.msk.f32.gmra.mxu0 %vm59_vm0, %v39_v15  ;;  %1177 = vmatprep.subr.mxu1 %v269_v21 }
   0xf   :  { %1156 = vmatprep.mubr.msk.f32.mxu0 %vm59_vm0, %v40_v16  ;;  %1178 = vmatpush3.msra.mxu1 %v269_v21 }
  0x10   :  { %1166 = vmatmul.mubr.msk.f32.gmra.mxu1 %vm59_vm0, %v47_v17  ;;  %1203 = vmatprep.subr.mxu0 %v493_v22 }
  0x11   :  { %1168 = vmatprep.mubr.msk.f32.mxu1 %vm59_vm0, %v48_v18  ;;  %1204 = vmatpush3.msra.mxu0 %v493_v22 }
  0x12   :  { %1157 = vmatmul.mubr.msk.f32.gmra.mxu0 %vm59_vm0, %v41_v19  ;;  %1205 = vmatprep.subr.mxu0 %v492_v23 }
  0x13   :  { %1206 = vmatpush3.msra.mxu0 %v492_v23 }
  0x14   :  { %1169 = vmatmul.mubr.msk.f32.gmra.mxu1 %vm59_vm0, %v49_v20  ;;  %1207 = vmatprep.subr.mxu0 %v491_v24 }
  0x15   :  { %1208 = vmatpush3.msra.mxu0 %v491_v24 }
  0x16   :  { %1209 = vmatprep.subr.mxu0 %v490_v10 }
  0x17   :  { %1210 = vmatpush3.msra.mxu0 %v490_v10 }
  0xc6   :  { %v1149_v26 = vpop.f32.mrf.mxu0 }
  0xc7   :  { %v180_v27 = vadd.f32 %v1149_v26, %v1032_v25 }
  0xc8   :  { %v174_v28 = vpop.f32.mrf.mxu0  ;;  %v1161_v29 = vpop.f32.mrf.mxu1 }
  0xc9   :  { %v175_v30 = vadd.f32 %v1032_v25, %v174_v28  ;;  %v254_v34 = vmax.f32 %v180_v27, 0.0  ;;  %v220_v56 = vadd.f32 %v1161_v29, %v1032_v25 }
  0xca   :  { %v1152_v31 = vpop.f32.mrf.mxu0  ;;  %v214_v32 = vpop.f32.mrf.mxu1 }
  0xcb   :  { %v253_v33 = vmax.f32 %v175_v30, 0.0  ;;  %v190_v35 = vadd.f32 %v1152_v31, %v1032_v25  ;;  %v215_v51 = vadd.f32 %v1032_v25, %v214_v32  ;;  %v262_v61 = vmax.f32 %v220_v56, 0.0 }
  0xcc   :  { %v184_v36 = vpop.f32.mrf.mxu0  ;;  %v1164_v37 = vpop.f32.mrf.mxu1 }
  0xcd   :  { %v185_v38 = vadd.f32 %v1032_v25, %v184_v36  ;;  %1179 = vmatprep.mubr.msk.f32.mxu1 %vm280_vm1, %v253_v33  ;;  %v256_v43 = vmax.f32 %v190_v35, 0.0  ;;  %v261_v58 = vmax.f32 %v215_v51, 0.0  ;;  %v230_v62 = vadd.f32 %v1164_v37, %v1032_v25 }
  0xce   :  { %v1155_v39 = vpop.f32.mrf.mxu0  ;;  %1180 = vmatmul.mubr.msk.f32.vlgmr.msra.gmra.mxu1 %vm280_vm1, %v254_v34  ;;  %v224_v40 = vpop.f32.mrf.mxu1 }
  0xcf   :  { %v255_v41 = vmax.f32 %v185_v38, 0.0  ;;  %v200_v42 = vadd.f32 %v1155_v39, %v1032_v25  ;;  %v225_v59 = vadd.f32 %v1032_v25, %v224_v40  ;;  %v264_v2 = vmax.f32 %v230_v62, 0.0 }
  0xd0   :  { %v194_v44 = vpop.f32.mrf.mxu0  ;;  %v1167_v45 = vpop.f32.mrf.mxu1 }
  0xd1   :  { %v195_v46 = vadd.f32 %v1032_v25, %v194_v44  ;;  %1182 = vmatprep.mubr.msk.f32.mxu1 %vm280_vm1, %v255_v41  ;;  %v258_v47 = vmax.f32 %v200_v42, 0.0  ;;  %v263_v63 = vmax.f32 %v225_v59, 0.0  ;;  %v240_v3 = vadd.f32 %v1167_v45, %v1032_v25 }
  0xd2   :  { %v1158_v48 = vpop.f32.mrf.mxu0  ;;  %1183 = vmatmul.mubr.msk.f32.gmra.mxu1 %vm280_vm1, %v256_v43  ;;  %v234_v53 = vpop.f32.mrf.mxu1 }
  0xd3   :  { %v257_v49 = vmax.f32 %v195_v46, 0.0  ;;  %v210_v50 = vadd.f32 %v1158_v48, %v1032_v25  ;;  %v235_v0 = vadd.f32 %v1032_v25, %v234_v53  ;;  %v266_v6 = vmax.f32 %v240_v3, 0.0 }
  0xd4   :  { %v204_v52 = vpop.f32.mrf.mxu0  ;;  %v1170_v60 = vpop.f32.mrf.mxu1 }
  0xd5   :  { %v205_v54 = vadd.f32 %v1032_v25, %v204_v52  ;;  %1185 = vmatprep.mubr.msk.f32.mxu1 %vm280_vm1, %v257_v49  ;;  %v260_v55 = vmax.f32 %v210_v50, 0.0  ;;  %v265_v4 = vmax.f32 %v235_v0, 0.0  ;;  %v250_v7 = vadd.f32 %v1170_v60, %v1032_v25  ;;  %v1066_v60 = vld [vmem:[%s1656_s6] ss:$0 sm:$0xff] }
  0xd6   :  { %1186 = vmatmul.mubr.msk.f32.gmra.mxu1 %vm280_vm1, %v258_v47  ;;  %v244_v1 = vpop.f32.mrf.mxu1 }
  0xd7   :  { %v259_v57 = vmax.f32 %v205_v54, 0.0  ;;  %v245_v5 = vadd.f32 %v1032_v25, %v244_v1  ;;  %v268_v9 = vmax.f32 %v250_v7, 0.0 }
  0xd9   :  { %1188 = vmatprep.mubr.msk.f32.mxu1 %vm280_vm1, %v259_v57  ;;  %v267_v8 = vmax.f32 %v245_v5, 0.0 }
  0xda   :  { %1189 = vmatmul.mubr.msk.f32.gmra.mxu1 %vm280_vm1, %v260_v55 }
  0xdb   :  { %1191 = vmatprep.mubr.msk.f32.mxu1 %vm280_vm1, %v261_v58 }
  0xde   :  { %1192 = vmatmul.mubr.msk.f32.gmra.mxu1 %vm280_vm1, %v262_v61 }
  0xdf   :  { %1194 = vmatprep.mubr.msk.f32.mxu1 %vm280_vm1, %v263_v63 }
  0xe2   :  { %1195 = vmatmul.mubr.msk.f32.gmra.mxu1 %vm280_vm1, %v264_v2 }
  0xe3   :  { %1197 = vmatprep.mubr.msk.f32.mxu1 %vm280_vm1, %v265_v4 }
  0xe6   :  { %1198 = vmatmul.mubr.msk.f32.gmra.mxu1 %vm280_vm1, %v266_v6 }
  0xe7   :  { %1200 = vmatprep.mubr.msk.f32.mxu1 %vm280_vm1, %v267_v8 }
  0xea   :  { %1201 = vmatmul.mubr.msk.f32.gmra.mxu1 %vm280_vm1, %v268_v9 }
 0x18e   :  { %v1181_v12 = vpop.f32.mrf.mxu1 }
 0x18f   :  { %v401_v13 = vadd.f32 %v1181_v12, %v1049_v11 }
 0x190   :  { %v395_v14 = vpop.f32.mrf.mxu1 }
 0x191   :  { %v396_v15 = vadd.f32 %v1049_v11, %v395_v14  ;;  %v475_v18 = vmax.f32 %v401_v13, 0.0 }
 0x192   :  { %v1184_v16 = vpop.f32.mrf.mxu1 }
 0x193   :  { %v474_v17 = vmax.f32 %v396_v15, 0.0  ;;  %v411_v19 = vadd.f32 %v1184_v16, %v1049_v11 }
 0x194   :  { %v405_v20 = vpop.f32.mrf.mxu1 }
 0x195   :  { %v406_v21 = vadd.f32 %v1049_v11, %v405_v20  ;;  %1211 = vmatprep.mubr.msk.f32.mxu0 %vm280_vm1, %v474_v17  ;;  %v477_v24 = vmax.f32 %v411_v19, 0.0 }
 0x196   :  { %v1187_v22 = vpop.f32.mrf.mxu1  ;;  %1212 = vmatmul.mubr.msk.f32.vlgmr.msra.gmra.mxu0 %vm280_vm1, %v475_v18 }
 0x197   :  { %v476_v23 = vmax.f32 %v406_v21, 0.0  ;;  %v421_v25 = vadd.f32 %v1187_v22, %v1049_v11 }
 0x198   :  { %v415_v26 = vpop.f32.mrf.mxu1 }
 0x199   :  { %v416_v27 = vadd.f32 %v1049_v11, %v415_v26  ;;  %1214 = vmatprep.mubr.msk.f32.mxu0 %vm280_vm1, %v476_v23  ;;  %v479_v30 = vmax.f32 %v421_v25, 0.0 }
 0x19a   :  { %v1190_v28 = vpop.f32.mrf.mxu1  ;;  %1215 = vmatmul.mubr.msk.f32.gmra.mxu0 %vm280_vm1, %v477_v24 }
 0x19b   :  { %v478_v29 = vmax.f32 %v416_v27, 0.0  ;;  %v431_v31 = vadd.f32 %v1190_v28, %v1049_v11 }
 0x19c   :  { %v425_v32 = vpop.f32.mrf.mxu1 }
 0x19d   :  { %v426_v33 = vadd.f32 %v1049_v11, %v425_v32  ;;  %1217 = vmatprep.mubr.msk.f32.mxu0 %vm280_vm1, %v478_v29  ;;  %v481_v36 = vmax.f32 %v431_v31, 0.0 }
 0x19e   :  { %v1193_v34 = vpop.f32.mrf.mxu1  ;;  %1218 = vmatmul.mubr.msk.f32.gmra.mxu0 %vm280_vm1, %v479_v30 }
 0x19f   :  { %v480_v35 = vmax.f32 %v426_v33, 0.0  ;;  %v441_v37 = vadd.f32 %v1193_v34, %v1049_v11 }
 0x1a0   :  { %v435_v38 = vpop.f32.mrf.mxu1 }
 0x1a1   :  { %v436_v39 = vadd.f32 %v1049_v11, %v435_v38  ;;  %1220 = vmatprep.mubr.msk.f32.mxu0 %vm280_vm1, %v480_v35  ;;  %v483_v42 = vmax.f32 %v441_v37, 0.0 }
 0x1a2   :  { %v1196_v40 = vpop.f32.mrf.mxu1  ;;  %1221 = vmatmul.mubr.msk.f32.gmra.mxu0 %vm280_vm1, %v481_v36 }
 0x1a3   :  { %v482_v41 = vmax.f32 %v436_v39, 0.0  ;;  %v451_v43 = vadd.f32 %v1196_v40, %v1049_v11 }
 0x1a4   :  { %v445_v44 = vpop.f32.mrf.mxu1 }
 0x1a5   :  { %v446_v45 = vadd.f32 %v1049_v11, %v445_v44  ;;  %1223 = vmatprep.mubr.msk.f32.mxu0 %vm280_vm1, %v482_v41  ;;  %v485_v48 = vmax.f32 %v451_v43, 0.0 }
 0x1a6   :  { %v1199_v46 = vpop.f32.mrf.mxu1  ;;  %1224 = vmatmul.mubr.msk.f32.gmra.mxu0 %vm280_vm1, %v483_v42 }
 0x1a7   :  { %v484_v47 = vmax.f32 %v446_v45, 0.0  ;;  %v461_v49 = vadd.f32 %v1199_v46, %v1049_v11 }
 0x1a8   :  { %v455_v50 = vpop.f32.mrf.mxu1 }
 0x1a9   :  { %v456_v51 = vadd.f32 %v1049_v11, %v455_v50  ;;  %1226 = vmatprep.mubr.msk.f32.mxu0 %vm280_vm1, %v484_v47  ;;  %v487_v54 = vmax.f32 %v461_v49, 0.0 }
 0x1aa   :  { %v1202_v52 = vpop.f32.mrf.mxu1  ;;  %1227 = vmatmul.mubr.msk.f32.gmra.mxu0 %vm280_vm1, %v485_v48 }
 0x1ab   :  { %v486_v53 = vmax.f32 %v456_v51, 0.0  ;;  %v471_v55 = vadd.f32 %v1202_v52, %v1049_v11 }
 0x1ac   :  { %v465_v56 = vpop.f32.mrf.mxu1 }
 0x1ad   :  { %v466_v57 = vadd.f32 %v1049_v11, %v465_v56  ;;  %1229 = vmatprep.mubr.msk.f32.mxu0 %vm280_vm1, %v486_v53  ;;  %v489_v59 = vmax.f32 %v471_v55, 0.0 }
 0x1ae   :  { %1230 = vmatmul.mubr.msk.f32.gmra.mxu0 %vm280_vm1, %v487_v54 }
 0x1af   :  { %v488_v58 = vmax.f32 %v466_v57, 0.0 }
 0x1b1   :  { %1232 = vmatprep.mubr.msk.f32.mxu0 %vm280_vm1, %v488_v58 }
 0x1b2   :  { %1233 = vmatmul.mubr.msk.f32.gmra.mxu0 %vm280_vm1, %v489_v59 }
 0x256   :  { %v1213_v61 = vpop.f32.mrf.mxu0 }
 0x257   :  { %v1456_v62 = vadd.f32 %v1213_v61, %v1066_v60 }
 0x258   :  { %v615_v63 = vpop.f32.mrf.mxu0 }
 0x259   :  { %v1458_v0 = vadd.f32 %v1066_v60, %v615_v63  ;;  %v697_v1 = vsel %vm280_vm1, %v1456_v62, 0.0 }
 0x25a   :  { %698 = vadd.xlane.f32.xlu0 %v697_v1  ;;  %v1216_v2 = vpop.f32.mrf.mxu0 }
 0x25b   :  { %v1462_v3 = vadd.f32 %v1216_v2, %v1066_v60  ;;  %v694_v7 = vsel %vm280_vm1, %v1458_v0, 0.0 }
 0x25c   :  { %v625_v4 = vpop.f32.mrf.mxu0 }
 0x25d   :  { %v1464_v5 = vadd.f32 %v1066_v60, %v625_v4  ;;  %v703_v6 = vsel %vm280_vm1, %v1462_v3, 0.0 }
 0x25e   :  { %704 = vadd.xlane.f32.xlu1 %v703_v6  ;;  %v1219_v8 = vpop.f32.mrf.mxu0  ;;  %695 = vadd.xlane.f32.xlu0 %v694_v7 }
 0x25f   :  { %v1470_v10 = vadd.f32 %v1219_v8, %v1066_v60  ;;  %v700_v12 = vsel %vm280_vm1, %v1464_v5, 0.0 }
 0x260   :  { %v635_v9 = vpop.f32.mrf.mxu0 }
 0x261   :  { %v1472_v11 = vadd.f32 %v1066_v60, %v635_v9  ;;  %v709_v18 = vsel %vm280_vm1, %v1470_v10, 0.0 }
 0x262   :  { %v1222_v13 = vpop.f32.mrf.mxu0  ;;  %701 = vadd.xlane.f32.xlu1 %v700_v12 }
 0x263   :  { %v706_v14 = vsel %vm280_vm1, %v1472_v11, 0.0  ;;  %v1478_v16 = vadd.f32 %v1222_v13, %v1066_v60 }
 0x264   :  { %v645_v15 = vpop.f32.mrf.mxu0  ;;  %707 = vadd.xlane.f32.xlu0 %v706_v14 }
 0x265   :  { %v1480_v17 = vadd.f32 %v1066_v60, %v645_v15  ;;  %v715_v24 = vsel %vm280_vm1, %v1478_v16, 0.0 }
 0x266   :  { %v1225_v19 = vpop.f32.mrf.mxu0  ;;  %710 = vadd.xlane.f32.xlu1 %v709_v18 }
 0x267   :  { %v712_v20 = vsel %vm280_vm1, %v1480_v17, 0.0  ;;  %v1486_v22 = vadd.f32 %v1225_v19, %v1066_v60 }
 0x268   :  { %v655_v21 = vpop.f32.mrf.mxu0  ;;  %713 = vadd.xlane.f32.xlu0 %v712_v20 }
 0x269   :  { %v1488_v23 = vadd.f32 %v1066_v60, %v655_v21  ;;  %v721_v30 = vsel %vm280_vm1, %v1486_v22, 0.0 }
 0x26a   :  { %v1228_v25 = vpop.f32.mrf.mxu0  ;;  %716 = vadd.xlane.f32.xlu1 %v715_v24 }
 0x26b   :  { %v718_v26 = vsel %vm280_vm1, %v1488_v23, 0.0  ;;  %v1494_v28 = vadd.f32 %v1228_v25, %v1066_v60 }
 0x26c   :  { %v665_v27 = vpop.f32.mrf.mxu0  ;;  %719 = vadd.xlane.f32.xlu0 %v718_v26 }
 0x26d   :  { %v1496_v29 = vadd.f32 %v1066_v60, %v665_v27  ;;  %v727_v36 = vsel %vm280_vm1, %v1494_v28, 0.0 }
 0x26e   :  { %v1231_v31 = vpop.f32.mrf.mxu0  ;;  %722 = vadd.xlane.f32.xlu1 %v721_v30 }
 0x26f   :  { %v724_v32 = vsel %vm280_vm1, %v1496_v29, 0.0  ;;  %v1502_v34 = vadd.f32 %v1231_v31, %v1066_v60 }
 0x270   :  { %v675_v33 = vpop.f32.mrf.mxu0  ;;  %725 = vadd.xlane.f32.xlu0 %v724_v32 }
 0x271   :  { %v1504_v35 = vadd.f32 %v1066_v60, %v675_v33  ;;  %v733_v42 = vsel %vm280_vm1, %v1502_v34, 0.0 }
 0x272   :  { %v1234_v37 = vpop.f32.mrf.mxu0  ;;  %728 = vadd.xlane.f32.xlu1 %v727_v36 }
 0x273   :  { %v730_v38 = vsel %vm280_vm1, %v1504_v35, 0.0  ;;  %v1510_v40 = vadd.f32 %v1234_v37, %v1066_v60 }
 0x274   :  { %v685_v39 = vpop.f32.mrf.mxu0  ;;  %731 = vadd.xlane.f32.xlu0 %v730_v38 }
 0x275   :  { %v1512_v41 = vadd.f32 %v1066_v60, %v685_v39  ;;  %v739_v44 = vsel %vm280_vm1, %v1510_v40, 0.0 }
 0x276   :  { %734 = vadd.xlane.f32.xlu1 %v733_v42 }
 0x277   :  { %v736_v43 = vsel %vm280_vm1, %v1512_v41, 0.0 }
 0x278   :  { %737 = vadd.xlane.f32.xlu0 %v736_v43 }
 0x27a   :  { %740 = vadd.xlane.f32.xlu1 %v739_v44 }
 0x2e3   :  { %v699_v45 = vpop.xlane.xlu0 %698 }
 0x2e4   :  { %v744_v46 = vmul.f32 0.03125, %v699_v45 }
 0x2e6   :  { %v1521_v47 = vsub.f32 %v1456_v62, %v744_v46 }
 0x2e7   :  { %v705_v48 = vpop.xlane.xlu1 %704  ;;  %v696_v49 = vpop.xlane.xlu0 %695 }
 0x2e8   :  { %v746_v50 = vmul.f32 0.03125, %v705_v48  ;;  %v743_v51 = vmul.f32 0.03125, %v696_v49  ;;  %v776_v52 = vmul.f32 %v1521_v47, %v1521_v47 }
 0x2ea   :  { %v1526_v53 = vsub.f32 %v1462_v3, %v746_v50  ;;  %v1529_v54 = vsub.f32 %v1458_v0, %v743_v51  ;;  %v794_v55 = vsel %vm280_vm1, %v776_v52, 0.0 }
 0x2eb   :  { %795 = vadd.xlane.f32.xlu1 %v794_v55  ;;  %v702_v56 = vpop.xlane.xlu1 %701 }
 0x2ec   :  { %v745_v57 = vmul.f32 0.03125, %v702_v56  ;;  %v778_v58 = vmul.f32 %v1526_v53, %v1526_v53  ;;  %v775_v59 = vmul.f32 %v1529_v54, %v1529_v54 }
 0x2ed   :  { %v708_v60 = vpop.xlane.xlu0 %707 }
 0x2ee   :  { %v1537_v61 = vsub.f32 %v1464_v5, %v745_v57  ;;  %v747_v62 = vmul.f32 0.03125, %v708_v60  ;;  %v800_v63 = vsel %vm280_vm1, %v778_v58, 0.0  ;;  %v791_v0 = vsel %vm280_vm1, %v775_v59, 0.0 }
 0x2ef   :  { %801 = vadd.xlane.f32.xlu1 %v800_v63  ;;  %v711_v1 = vpop.xlane.xlu1 %710  ;;  %792 = vadd.xlane.f32.xlu0 %v791_v0 }
 0x2f0   :  { %v1542_v2 = vsub.f32 %v1472_v11, %v747_v62  ;;  %v748_v3 = vmul.f32 0.03125, %v711_v1  ;;  %v777_v4 = vmul.f32 %v1537_v61, %v1537_v61 }
 0x2f1   :  { %v714_v6 = vpop.xlane.xlu0 %713 }
 0x2f2   :  { %v1547_v7 = vsub.f32 %v1470_v10, %v748_v3  ;;  %v749_v5 = vmul.f32 0.03125, %v714_v6  ;;  %v797_v8 = vsel %vm280_vm1, %v777_v4, 0.0  ;;  %v779_v9 = vmul.f32 %v1542_v2, %v1542_v2 }
 0x2f3   :  { %v717_v12 = vpop.xlane.xlu1 %716  ;;  %798 = vadd.xlane.f32.xlu0 %v797_v8 }
 0x2f4   :  { %v1553_v13 = vsub.f32 %v1480_v17, %v749_v5  ;;  %v750_v11 = vmul.f32 0.03125, %v717_v12  ;;  %v780_v14 = vmul.f32 %v1547_v7, %v1547_v7  ;;  %v803_v18 = vsel %vm280_vm1, %v779_v9, 0.0 }
 0x2f5   :  { %v720_v15 = vpop.xlane.xlu0 %719 }
 0x2f6   :  { %v1559_v10 = vsub.f32 %v1478_v16, %v750_v11  ;;  %v751_v19 = vmul.f32 0.03125, %v720_v15  ;;  %v806_v20 = vsel %vm280_vm1, %v780_v14, 0.0  ;;  %v781_v21 = vmul.f32 %v1553_v13, %v1553_v13 }
 0x2f7   :  { %807 = vadd.xlane.f32.xlu1 %v806_v20  ;;  %v723_v24 = vpop.xlane.xlu1 %722  ;;  %804 = vadd.xlane.f32.xlu0 %v803_v18 }
 0x2f8   :  { %v767_v17 = vsub.f32 %v1488_v23, %v751_v19  ;;  %v752_v25 = vmul.f32 0.03125, %v723_v24  ;;  %v782_v26 = vmul.f32 %v1559_v10, %v1559_v10  ;;  %v809_v30 = vsel %vm280_vm1, %v781_v21, 0.0 }
 0x2f9   :  { %v726_v27 = vpop.xlane.xlu0 %725 }
 0x2fa   :  { %v768_v16 = vsub.f32 %v1486_v22, %v752_v25  ;;  %v753_v31 = vmul.f32 0.03125, %v726_v27  ;;  %v812_v32 = vsel %vm280_vm1, %v782_v26, 0.0  ;;  %v783_v33 = vmul.f32 %v767_v17, %v767_v17 }
 0x2fb   :  { %813 = vadd.xlane.f32.xlu1 %v812_v32  ;;  %v729_v36 = vpop.xlane.xlu1 %728  ;;  %810 = vadd.xlane.f32.xlu0 %v809_v30  ;;  %v1587_v32 = vld [vmem:[%s1657_s7] ss:$0 sm:$0xff] }
 0x2fc   :  { %v769_v37 = vsub.f32 %v1496_v29, %v753_v31  ;;  %v754_v38 = vmul.f32 0.03125, %v729_v36  ;;  %v784_v23 = vmul.f32 %v768_v16, %v768_v16  ;;  %v815_v42 = vsel %vm280_vm1, %v783_v33, 0.0 }
 0x2fd   :  { %v732_v39 = vpop.xlane.xlu0 %731 }
 0x2fe   :  { %v770_v43 = vsub.f32 %v1494_v28, %v754_v38  ;;  %v755_v44 = vmul.f32 0.03125, %v732_v39  ;;  %v818_v45 = vsel %vm280_vm1, %v784_v23, 0.0  ;;  %v785_v22 = vmul.f32 %v769_v37, %v769_v37  ;;  %v1593_v38 = vld [vmem:[%s1658_s8] ss:$0 sm:$0xff] }
 0x2ff   :  { %819 = vadd.xlane.f32.xlu1 %v818_v45  ;;  %v735_v46 = vpop.xlane.xlu1 %734  ;;  %816 = vadd.xlane.f32.xlu0 %v815_v42 }
 0x300   :  { %v771_v48 = vsub.f32 %v1504_v35, %v755_v44  ;;  %v756_v49 = vmul.f32 0.03125, %v735_v46  ;;  %v786_v50 = vmul.f32 %v770_v43, %v770_v43  ;;  %v821_v29 = vsel %vm280_vm1, %v785_v22, 0.0 }
 0x301   :  { %v738_v51 = vpop.xlane.xlu0 %737 }
 0x302   :  { %v772_v52 = vsub.f32 %v1502_v34, %v756_v49  ;;  %v757_v55 = vmul.f32 0.03125, %v738_v51  ;;  %v824_v56 = vsel %vm280_vm1, %v786_v50, 0.0  ;;  %v787_v28 = vmul.f32 %v771_v48, %v771_v48 }
 0x303   :  { %825 = vadd.xlane.f32.xlu1 %v824_v56  ;;  %v741_v57 = vpop.xlane.xlu1 %740  ;;  %822 = vadd.xlane.f32.xlu0 %v821_v29 }
 0x304   :  { %v773_v58 = vsub.f32 %v1512_v41, %v757_v55  ;;  %v758_v59 = vmul.f32 0.03125, %v741_v57  ;;  %v788_v60 = vmul.f32 %v772_v52, %v772_v52  ;;  %v827_v63 = vsel %vm280_vm1, %v787_v28, 0.0 }
 0x306   :  { %v774_v35 = vsub.f32 %v1510_v40, %v758_v59  ;;  %v830_v62 = vsel %vm280_vm1, %v788_v60, 0.0  ;;  %v789_v0 = vmul.f32 %v773_v58, %v773_v58 }
 0x307   :  { %831 = vadd.xlane.f32.xlu1 %v830_v62  ;;  %828 = vadd.xlane.f32.xlu0 %v827_v63 }
 0x308   :  { %v790_v34 = vmul.f32 %v774_v35, %v774_v35  ;;  %v833_v3 = vsel %vm280_vm1, %v789_v0, 0.0 }
 0x30a   :  { %v836_v1 = vsel %vm280_vm1, %v790_v34, 0.0 }
 0x30b   :  { %837 = vadd.xlane.f32.xlu1 %v836_v1  ;;  %834 = vadd.xlane.f32.xlu0 %v833_v3 }
 0x374   :  { %v796_v4 = vpop.xlane.xlu1 %795 }
 0x375   :  { %v840_v41 = vmul.f32 0.03125, %v796_v4 }
 0x377   :  { %v856_v6 = vadd.f32 1e-05, %v840_v41 }
 0x378   :  { %v802_v5 = vpop.xlane.xlu1 %801  ;;  %v793_v8 = vpop.xlane.xlu0 %792 }
 0x379   :  { %1239 = vrsqrt.f32 %v856_v6  ;;  %v842_v40 = vmul.f32 0.03125, %v802_v5  ;;  %v839_v9 = vmul.f32 0.03125, %v793_v8 }
 0x37b   :  { %v858_v12 = vadd.f32 1e-05, %v842_v40  ;;  %v855_v11 = vadd.f32 1e-05, %v839_v9 }
 0x37c   :  { %v799_v14 = vpop.xlane.xlu0 %798 }
 0x37d   :  { %1241 = vrsqrt.f32 %v858_v12  ;;  %v841_v15 = vmul.f32 0.03125, %v799_v14 }
 0x37e   :  { %1243 = vrsqrt.f32 %v855_v11 }
 0x37f   :  { %v857_v18 = vadd.f32 1e-05, %v841_v15 }
 0x380   :  { %v808_v19 = vpop.xlane.xlu1 %807  ;;  %v805_v20 = vpop.xlane.xlu0 %804 }
 0x381   :  { %1245 = vrsqrt.f32 %v857_v18  ;;  %v844_v21 = vmul.f32 0.03125, %v808_v19  ;;  %v843_v24 = vmul.f32 0.03125, %v805_v20 }
 0x383   :  { %v860_v17 = vadd.f32 1e-05, %v844_v21  ;;  %v859_v25 = vadd.f32 1e-05, %v843_v24 }
 0x384   :  { %v814_v26 = vpop.xlane.xlu1 %813  ;;  %v811_v27 = vpop.xlane.xlu0 %810 }
 0x385   :  { %1247 = vrsqrt.f32 %v860_v17  ;;  %v846_v30 = vmul.f32 0.03125, %v814_v26  ;;  %v845_v16 = vmul.f32 0.03125, %v811_v27 }
 0x386   :  { %v1240_v31 = vpop.eup %1239  ;;  %1249 = vrsqrt.f32 %v859_v25 }
 0x387   :  { %v888_v33 = vmul.f32 %v1240_v31, %v1521_v47  ;;  %v862_v36 = vadd.f32 1e-05, %v846_v30  ;;  %v861_v37 = vadd.f32 1e-05, %v845_v16 }
 0x388   :  { %v820_v23 = vpop.xlane.xlu1 %819  ;;  %v817_v39 = vpop.xlane.xlu0 %816 }
 0x389   :  { %v910_v42 = vmul.f32 %v1587_v32, %v888_v33  ;;  %1251 = vrsqrt.f32 %v862_v36  ;;  %v848_v43 = vmul.f32 0.03125, %v820_v23  ;;  %v847_v44 = vmul.f32 0.03125, %v817_v39 }
 0x38a   :  { %v1242_v45 = vpop.eup %1241  ;;  %1253 = vrsqrt.f32 %v861_v37 }
 0x38b   :  { %v1244_v22 = vpop.eup %1243  ;;  %v932_v46 = vadd.f32 %v1593_v38, %v910_v42  ;;  %v890_v47 = vmul.f32 %v1242_v45, %v1526_v53  ;;  %v864_v48 = vadd.f32 1e-05, %v848_v43  ;;  %v863_v49 = vadd.f32 1e-05, %v847_v44 }
 0x38c   :  { %v887_v50 = vmul.f32 %v1244_v22, %v1529_v54  ;;  %v826_v51 = vpop.xlane.xlu1 %825  ;;  %v823_v29 = vpop.xlane.xlu0 %822 }
 0x38d   :  { %948 = vst.msk [vmem:[#allocation2 + $0x8] sm:$0xff] %vm280_vm1, %v932_v46  ;;  %v912_v52 = vmul.f32 %v1587_v32, %v890_v47  ;;  %1255 = vrsqrt.f32 %v864_v48  ;;  %v850_v55 = vmul.f32 0.03125, %v826_v51  ;;  %v849_v56 = vmul.f32 0.03125, %v823_v29 }
 0x38e   :  { %v1246_v28 = vpop.eup %1245  ;;  %v909_v57 = vmul.f32 %v1587_v32, %v887_v50  ;;  %1257 = vrsqrt.f32 %v863_v49 }
 0x38f   :  { %v934_v58 = vadd.f32 %v1593_v38, %v912_v52  ;;  %v889_v53 = vmul.f32 %v1246_v28, %v1537_v61  ;;  %v866_v59 = vadd.f32 1e-05, %v850_v55  ;;  %v865_v60 = vadd.f32 1e-05, %v849_v56 }
 0x390   :  { %v931_v54 = vadd.f32 %v1593_v38, %v909_v57  ;;  %v832_v35 = vpop.xlane.xlu1 %831  ;;  %v829_v62 = vpop.xlane.xlu0 %828 }
 0x391   :  { %950 = vst.msk [vmem:[#allocation2 + $0x18] sm:$0xff] %vm280_vm1, %v934_v58  ;;  %v911_v63 = vmul.f32 %v1587_v32, %v889_v53  ;;  %1259 = vrsqrt.f32 %v866_v59  ;;  %v852_v0 = vmul.f32 0.03125, %v832_v35  ;;  %v851_v34 = vmul.f32 0.03125, %v829_v62 }
 0x392   :  { %v1248_v1 = vpop.eup %1247  ;;  %947 = vst.msk [vmem:[#allocation2] sm:$0xff] %vm280_vm1, %v931_v54  ;;  %1261 = vrsqrt.f32 %v865_v60 }
 0x393   :  { %v1250_v3 = vpop.eup %1249  ;;  %v933_v61 = vadd.f32 %v1593_v38, %v911_v63  ;;  %v892_v4 = vmul.f32 %v1248_v1, %v1547_v7  ;;  %v868_v41 = vadd.f32 1e-05, %v852_v0  ;;  %v867_v6 = vadd.f32 1e-05, %v851_v34 }
 0x394   :  { %v1009_v5 = vld [vmem:[#allocation2 + $0x8] sm:$0xff]  ;;  %v891_v8 = vmul.f32 %v1250_v3, %v1542_v2  ;;  %v838_v40 = vpop.xlane.xlu1 %837  ;;  %v835_v9 = vpop.xlane.xlu0 %834 }
 0x395   :  { %1010 = vst [vmem:[%s1659_s9 + $0x8] sm:$0xff] %v1009_v5  ;;  %949 = vst.msk [vmem:[#allocation2 + $0x10] sm:$0xff] %vm280_vm1, %v933_v61  ;;  %v914_v12 = vmul.f32 %v1587_v32, %v892_v4  ;;  %1263 = vrsqrt.f32 %v868_v41  ;;  %v854_v11 = vmul.f32 0.03125, %v838_v40  ;;  %v853_v14 = vmul.f32 0.03125, %v835_v9 }
 0x396   :  { %v1252_v15 = vpop.eup %1251  ;;  %v913_v7 = vmul.f32 %v1587_v32, %v891_v8  ;;  %1265 = vrsqrt.f32 %v867_v6 }
 0x397   :  { %v1254_v18 = vpop.eup %1253  ;;  %v936_v2 = vadd.f32 %v1593_v38, %v914_v12  ;;  %v894_v19 = vmul.f32 %v1252_v15, %v1559_v10  ;;  %v870_v20 = vadd.f32 1e-05, %v854_v11  ;;  %v869_v21 = vadd.f32 1e-05, %v853_v14 }
 0x398   :  { %v1013_v24 = vld [vmem:[#allocation2 + $0x18] sm:$0xff]  ;;  %v935_v17 = vadd.f32 %v1593_v38, %v913_v7  ;;  %v893_v25 = vmul.f32 %v1254_v18, %v1553_v13 }
 0x399   :  { %1014 = vst [vmem:[%s1659_s9 + $0x18] sm:$0xff] %v1013_v24  ;;  %v1007_v26 = vld [vmem:[#allocation2] sm:$0xff]  ;;  %952 = vst.msk [vmem:[#allocation2 + $0x28] sm:$0xff] %vm280_vm1, %v936_v2  ;;  %v916_v27 = vmul.f32 %v1587_v32, %v894_v19  ;;  %1267 = vrsqrt.f32 %v870_v20 }
 0x39a   :  { %v1256_v30 = vpop.eup %1255  ;;  %1008 = vst [vmem:[%s1659_s9] sm:$0xff] %v1007_v26  ;;  %951 = vst.msk [vmem:[#allocation2 + $0x20] sm:$0xff] %vm280_vm1, %v935_v17  ;;  %v915_v10 = vmul.f32 %v1587_v32, %v893_v25  ;;  %1269 = vrsqrt.f32 %v869_v21 }
 0x39b   :  { %v1258_v13 = vpop.eup %1257  ;;  %v938_v16 = vadd.f32 %v1593_v38, %v916_v27 }
 0x39c   :  { %v1011_v31 = vld [vmem:[#allocation2 + $0x10] sm:$0xff]  ;;  %v937_v33 = vadd.f32 %v1593_v38, %v915_v10 }
 0x39d   :  { %1012 = vst [vmem:[%s1659_s9 + $0x10] sm:$0xff] %v1011_v31  ;;  %954 = vst.msk [vmem:[#allocation2 + $0x38] sm:$0xff] %vm280_vm1, %v938_v16 }
 0x39e   :  { %v1260_v36 = vpop.eup %1259  ;;  %953 = vst.msk [vmem:[#allocation2 + $0x30] sm:$0xff] %vm280_vm1, %v937_v33 }
 0x39f   :  { %v1262_v37 = vpop.eup %1261 }
 0x3a0   :  { %v1017_v23 = vld [vmem:[#allocation2 + $0x28] sm:$0xff] }
 0x3a1   :  { %1018 = vst [vmem:[%s1659_s9 + $0x28] sm:$0xff] %v1017_v23  ;;  %v1015_v32 = vld [vmem:[#allocation2 + $0x20] sm:$0xff] }
 0x3a2   :  { %v1264_v39 = vpop.eup %1263  ;;  %1016 = vst [vmem:[%s1659_s9 + $0x20] sm:$0xff] %v1015_v32 }
 0x3a3   :  { %v1266_v38 = vpop.eup %1265 }
 0x3a4   :  { %v1021_v42 = vld [vmem:[#allocation2 + $0x38] sm:$0xff] }
 0x3a5   :  { %1022 = vst [vmem:[%s1659_s9 + $0x38] sm:$0xff] %v1021_v42  ;;  %v1019_v43 = vld [vmem:[#allocation2 + $0x30] sm:$0xff] }
 0x3a6   :  { %v1268_v44 = vpop.eup %1267  ;;  %1020 = vst [vmem:[%s1659_s9 + $0x30] sm:$0xff] %v1019_v43 }
 0x3a7   :  { %v1270_v45 = vpop.eup %1269 }

// kernel: _encoder_forward.3
= control target key start
LH: loop header
LB: loop body
LE: loop exit
PB: predicated region body
PF: predicated region fallthrough
CT: control target
= control target key end

     0   :  { %vm108_vm0 = vcmask 1043456   ;;  %vm59_vm1 = vcmask 97280   ;;  %vm284_vm2 = vcmask 261120   ;;  %s1678_s1 = inlined_call_operand.vmem [shape: f32[12,32], index: 1, kind: input, shape index: {}]   ;;  %s1679_s0 = inlined_call_operand.vmem [shape: f32[128,12], index: 0, kind: input, shape index: {}]   ;;  %s1680_s3 = inlined_call_operand.vmem [shape: f32[32,32], index: 3, kind: input, shape index: {}]   ;;  %s1681_s5 = inlined_call_operand.vmem [shape: f32[32,32], index: 5, kind: input, shape index: {}]   ;;  %s1682_s2 = inlined_call_operand.vmem [shape: f32[1,32], index: 2, kind: input, shape index: {}]   ;;  %s1683_s4 = inlined_call_operand.vmem [shape: f32[1,32], index: 4, kind: input, shape index: {}]   ;;  %s1684_s6 = inlined_call_operand.vmem [shape: f32[1,32], index: 6, kind: input, shape index: {}]   ;;  %s1685_s7 = inlined_call_operand.vmem [shape: f32[1,32], index: 7, kind: input, shape index: {}]   ;;  %s1686_s8 = inlined_call_operand.vmem [shape: f32[1,32], index: 8, kind: input, shape index: {}]   ;;  %s1687_s9 = inlined_call_operand.vmem [shape: f32[128,32], index: 9, kind: output, shape index: {}]  }
   0x1   :  { %v51_v0 = vld [vmem:[%s1678_s1 + $0x8] sm:$0xf]  ;;  %v50_v1 = vld [vmem:[%s1678_s1] sm:$0xff]  ;;  %v36_v4 = vld [vmem:[%s1679_s0 + $0x10] sm:$0xff] }
   0x2   :  { %v34_v2 = vld [vmem:[%s1679_s0] sm:$0xff]  ;;  %1083 = vmatprep.subr.msk.mxu0 %vm108_vm0, %v51_v0  ;;  %v35_v3 = vld [vmem:[%s1679_s0 + $0x8] sm:$0xff]  ;;  %1175 = vmatprep.subr.msk.mxu1 %vm108_vm0, %v51_v0  ;;  %v44_v7 = vld [vmem:[%s1679_s0 + $0x50] sm:$0xff] }
   0x3   :  { %1087 = vmatprep.mubr.msk.f32.mxu0 %vm59_vm1, %v34_v2  ;;  %1084 = vmatpush3.msk.msra.mxu0 %vm108_vm0, %v51_v0  ;;  %v42_v5 = vld [vmem:[%s1679_s0 + $0x40] sm:$0xff]  ;;  %v43_v6 = vld [vmem:[%s1679_s0 + $0x48] sm:$0xff]  ;;  %v37_v8 = vld [vmem:[%s1679_s0 + $0x18] sm:$0xff] }
   0x4   :  { %1085 = vmatprep.subr.mxu0 %v50_v1  ;;  %1177 = vmatpush3.msk.msra.mxu1 %vm108_vm0, %v51_v0  ;;  %v276_v9 = vld [vmem:[%s1680_s3 + $0x18] sm:$0xff]  ;;  %v275_v10 = vld [vmem:[%s1680_s3 + $0x10] sm:$0xff]  ;;  %v38_v11 = vld [vmem:[%s1679_s0 + $0x20] sm:$0xff] }
   0x5   :  { %1086 = vmatpush3.msra.mxu0 %v50_v1  ;;  %1176 = vmatprep.subr.mxu1 %v50_v1  ;;  %v45_v12 = vld [vmem:[%s1679_s0 + $0x58] sm:$0xff]  ;;  %v274_v13 = vld [vmem:[%s1680_s3 + $0x8] sm:$0xff]  ;;  %v46_v14 = vld [vmem:[%s1679_s0 + $0x60] sm:$0xff] }
   0x6   :  { %1088 = vmatmul.mubr.msk.f32.vlgmr.msra.gmra.mxu0 %vm59_vm1, %v35_v3  ;;  %1178 = vmatpush3.msra.mxu1 %v50_v1  ;;  %v39_v15 = vld [vmem:[%s1679_s0 + $0x28] sm:$0xff]  ;;  %v40_v16 = vld [vmem:[%s1679_s0 + $0x30] sm:$0xff]  ;;  %v41_v19 = vld [vmem:[%s1679_s0 + $0x38] sm:$0xff] }
   0x7   :  { %1090 = vmatprep.mubr.msk.f32.mxu0 %vm59_vm1, %v36_v4  ;;  %1099 = vmatprep.mubr.msk.f32.mxu1 %vm59_vm1, %v42_v5  ;;  %v47_v17 = vld [vmem:[%s1679_s0 + $0x68] sm:$0xff]  ;;  %v48_v18 = vld [vmem:[%s1679_s0 + $0x70] sm:$0xff]  ;;  %v49_v20 = vld [vmem:[%s1679_s0 + $0x78] sm:$0xff] }
   0x8   :  { %1100 = vmatmul.mubr.msk.f32.vlgmr.msra.gmra.mxu1 %vm59_vm1, %v43_v6  ;;  %1111 = vmatprep.subr.mxu1 %v276_v9  ;;  %v273_v21 = vld [vmem:[%s1680_s3] sm:$0xff]  ;;  %v497_v22 = vld [vmem:[%s1681_s5 + $0x18] sm:$0xff]  ;;  %v496_v23 = vld [vmem:[%s1681_s5 + $0x10] sm:$0xff] }
   0x9   :  { %1102 = vmatprep.mubr.msk.f32.mxu1 %vm59_vm1, %v44_v7  ;;  %1112 = vmatpush3.msra.mxu1 %v276_v9  ;;  %v495_v24 = vld [vmem:[%s1681_s5 + $0x8] sm:$0xff]  ;;  %v971_v25 = vld [vmem:[%s1682_s2] ss:$0 sm:$0xff] }
   0xa   :  { %1091 = vmatmul.mubr.msk.f32.gmra.mxu0 %vm59_vm1, %v37_v8  ;;  %1113 = vmatprep.subr.mxu1 %v275_v10 }
   0xb   :  { %1093 = vmatprep.mubr.msk.f32.mxu0 %vm59_vm1, %v38_v11  ;;  %1114 = vmatpush3.msra.mxu1 %v275_v10  ;;  %v494_v10 = vld [vmem:[%s1681_s5] sm:$0xff] }
   0xc   :  { %1103 = vmatmul.mubr.msk.f32.gmra.mxu1 %vm59_vm1, %v45_v12  ;;  %1115 = vmatprep.subr.mxu1 %v274_v13  ;;  %v989_v11 = vld [vmem:[%s1683_s4] ss:$0 sm:$0xff] }
   0xd   :  { %1105 = vmatprep.mubr.msk.f32.mxu1 %vm59_vm1, %v46_v14  ;;  %1116 = vmatpush3.msra.mxu1 %v274_v13 }
   0xe   :  { %1094 = vmatmul.mubr.msk.f32.gmra.mxu0 %vm59_vm1, %v39_v15  ;;  %1117 = vmatprep.subr.mxu1 %v273_v21 }
   0xf   :  { %1096 = vmatprep.mubr.msk.f32.mxu0 %vm59_vm1, %v40_v16  ;;  %1118 = vmatpush3.msra.mxu1 %v273_v21 }
  0x10   :  { %1106 = vmatmul.mubr.msk.f32.gmra.mxu1 %vm59_vm1, %v47_v17  ;;  %1143 = vmatprep.subr.mxu0 %v497_v22 }
  0x11   :  { %1108 = vmatprep.mubr.msk.f32.mxu1 %vm59_vm1, %v48_v18  ;;  %1144 = vmatpush3.msra.mxu0 %v497_v22 }
  0x12   :  { %1097 = vmatmul.mubr.msk.f32.gmra.mxu0 %vm59_vm1, %v41_v19  ;;  %1145 = vmatprep.subr.mxu0 %v496_v23 }
  0x13   :  { %1146 = vmatpush3.msra.mxu0 %v496_v23 }
  0x14   :  { %1109 = vmatmul.mubr.msk.f32.gmra.mxu1 %vm59_vm1, %v49_v20  ;;  %1147 = vmatprep.subr.mxu0 %v495_v24 }
  0x15   :  { %1148 = vmatpush3.msra.mxu0 %v495_v24 }
  0x16   :  { %1149 = vmatprep.subr.mxu0 %v494_v10 }
  0x17   :  { %1150 = vmatpush3.msra.mxu0 %v494_v10 }
  0xc6   :  { %v1089_v26 = vpop.f32.mrf.mxu0 }
  0xc7   :  { %v184_v27 = vadd.f32 %v1089_v26, %v971_v25 }
  0xc8   :  { %v178_v28 = vpop.f32.mrf.mxu0  ;;  %v1101_v29 = vpop.f32.mrf.mxu1 }
  0xc9   :  { %v179_v30 = vadd.f32 %v971_v25, %v178_v28  ;;  %v258_v34 = vmax.f32 %v184_v27, 0.0  ;;  %v224_v56 = vadd.f32 %v1101_v29, %v971_v25 }
  0xca   :  { %v1092_v31 = vpop.f32.mrf.mxu0  ;;  %v218_v32 = vpop.f32.mrf.mxu1 }
  0xcb   :  { %v257_v33 = vmax.f32 %v179_v30, 0.0  ;;  %v194_v35 = vadd.f32 %v1092_v31, %v971_v25  ;;  %v219_v51 = vadd.f32 %v971_v25, %v218_v32  ;;  %v266_v61 = vmax.f32 %v224_v56, 0.0 }
  0xcc   :  { %v188_v36 = vpop.f32.mrf.mxu0  ;;  %v1104_v37 = vpop.f32.mrf.mxu1 }
  0xcd   :  { %v189_v38 = vadd.f32 %v971_v25, %v188_v36  ;;  %1119 = vmatprep.mubr.msk.f32.mxu1 %vm284_vm2, %v257_v33  ;;  %v260_v43 = vmax.f32 %v194_v35, 0.0  ;;  %v265_v58 = vmax.f32 %v219_v51, 0.0  ;;  %v234_v62 = vadd.f32 %v1104_v37, %v971_v25 }
  0xce   :  { %v1095_v39 = vpop.f32.mrf.mxu0  ;;  %1120 = vmatmul.mubr.msk.f32.vlgmr.msra.gmra.mxu1 %vm284_vm2, %v258_v34  ;;  %v228_v40 = vpop.f32.mrf.mxu1 }
  0xcf   :  { %v259_v41 = vmax.f32 %v189_v38, 0.0  ;;  %v204_v42 = vadd.f32 %v1095_v39, %v971_v25  ;;  %v229_v59 = vadd.f32 %v971_v25, %v228_v40  ;;  %v268_v2 = vmax.f32 %v234_v62, 0.0 }
  0xd0   :  { %v198_v44 = vpop.f32.mrf.mxu0  ;;  %v1107_v45 = vpop.f32.mrf.mxu1 }
  0xd1   :  { %v199_v46 = vadd.f32 %v971_v25, %v198_v44  ;;  %1122 = vmatprep.mubr.msk.f32.mxu1 %vm284_vm2, %v259_v41  ;;  %v262_v47 = vmax.f32 %v204_v42, 0.0  ;;  %v267_v63 = vmax.f32 %v229_v59, 0.0  ;;  %v244_v3 = vadd.f32 %v1107_v45, %v971_v25 }
  0xd2   :  { %v1098_v48 = vpop.f32.mrf.mxu0  ;;  %1123 = vmatmul.mubr.msk.f32.gmra.mxu1 %vm284_vm2, %v260_v43  ;;  %v238_v53 = vpop.f32.mrf.mxu1 }
  0xd3   :  { %v261_v49 = vmax.f32 %v199_v46, 0.0  ;;  %v214_v50 = vadd.f32 %v1098_v48, %v971_v25  ;;  %v239_v0 = vadd.f32 %v971_v25, %v238_v53  ;;  %v270_v6 = vmax.f32 %v244_v3, 0.0 }
  0xd4   :  { %v208_v52 = vpop.f32.mrf.mxu0  ;;  %v1110_v60 = vpop.f32.mrf.mxu1 }
  0xd5   :  { %v209_v54 = vadd.f32 %v971_v25, %v208_v52  ;;  %1125 = vmatprep.mubr.msk.f32.mxu1 %vm284_vm2, %v261_v49  ;;  %v264_v55 = vmax.f32 %v214_v50, 0.0  ;;  %v269_v4 = vmax.f32 %v239_v0, 0.0  ;;  %v254_v7 = vadd.f32 %v1110_v60, %v971_v25  ;;  %v1006_v60 = vld [vmem:[%s1684_s6] ss:$0 sm:$0xff] }
  0xd6   :  { %1126 = vmatmul.mubr.msk.f32.gmra.mxu1 %vm284_vm2, %v262_v47  ;;  %v248_v1 = vpop.f32.mrf.mxu1 }
  0xd7   :  { %v263_v57 = vmax.f32 %v209_v54, 0.0  ;;  %v249_v5 = vadd.f32 %v971_v25, %v248_v1  ;;  %v272_v9 = vmax.f32 %v254_v7, 0.0 }
  0xd9   :  { %1128 = vmatprep.mubr.msk.f32.mxu1 %vm284_vm2, %v263_v57  ;;  %v271_v8 = vmax.f32 %v249_v5, 0.0 }
  0xda   :  { %1129 = vmatmul.mubr.msk.f32.gmra.mxu1 %vm284_vm2, %v264_v55 }
  0xdb   :  { %1131 = vmatprep.mubr.msk.f32.mxu1 %vm284_vm2, %v265_v58 }
  0xde   :  { %1132 = vmatmul.mubr.msk.f32.gmra.mxu1 %vm284_vm2, %v266_v61 }
  0xdf   :  { %1134 = vmatprep.mubr.msk.f32.mxu1 %vm284_vm2, %v267_v63 }
  0xe2   :  { %1135 = vmatmul.mubr.msk.f32.gmra.mxu1 %vm284_vm2, %v268_v2 }
  0xe3   :  { %1137 = vmatprep.mubr.msk.f32.mxu1 %vm284_vm2, %v269_v4 }
  0xe6   :  { %1138 = vmatmul.mubr.msk.f32.gmra.mxu1 %vm284_vm2, %v270_v6 }
  0xe7   :  { %1140 = vmatprep.mubr.msk.f32.mxu1 %vm284_vm2, %v271_v8 }
  0xea   :  { %1141 = vmatmul.mubr.msk.f32.gmra.mxu1 %vm284_vm2, %v272_v9 }
 0x18e   :  { %v1121_v12 = vpop.f32.mrf.mxu1 }
 0x18f   :  { %v405_v13 = vadd.f32 %v1121_v12, %v989_v11 }
 0x190   :  { %v399_v14 = vpop.f32.mrf.mxu1 }
 0x191   :  { %v400_v15 = vadd.f32 %v989_v11, %v399_v14  ;;  %v479_v18 = vmax.f32 %v405_v13, 0.0 }
 0x192   :  { %v1124_v16 = vpop.f32.mrf.mxu1 }
 0x193   :  { %v478_v17 = vmax.f32 %v400_v15, 0.0  ;;  %v415_v19 = vadd.f32 %v1124_v16, %v989_v11 }
 0x194   :  { %v409_v20 = vpop.f32.mrf.mxu1 }
 0x195   :  { %v410_v21 = vadd.f32 %v989_v11, %v409_v20  ;;  %1151 = vmatprep.mubr.msk.f32.mxu0 %vm284_vm2, %v478_v17  ;;  %v481_v24 = vmax.f32 %v415_v19, 0.0 }
 0x196   :  { %v1127_v22 = vpop.f32.mrf.mxu1  ;;  %1152 = vmatmul.mubr.msk.f32.vlgmr.msra.gmra.mxu0 %vm284_vm2, %v479_v18 }
 0x197   :  { %v480_v23 = vmax.f32 %v410_v21, 0.0  ;;  %v425_v25 = vadd.f32 %v1127_v22, %v989_v11 }
 0x198   :  { %v419_v26 = vpop.f32.mrf.mxu1 }
 0x199   :  { %v420_v27 = vadd.f32 %v989_v11, %v419_v26  ;;  %1154 = vmatprep.mubr.msk.f32.mxu0 %vm284_vm2, %v480_v23  ;;  %v483_v30 = vmax.f32 %v425_v25, 0.0 }
 0x19a   :  { %v1130_v28 = vpop.f32.mrf.mxu1  ;;  %1155 = vmatmul.mubr.msk.f32.gmra.mxu0 %vm284_vm2, %v481_v24 }
 0x19b   :  { %v482_v29 = vmax.f32 %v420_v27, 0.0  ;;  %v435_v31 = vadd.f32 %v1130_v28, %v989_v11 }
 0x19c   :  { %v429_v32 = vpop.f32.mrf.mxu1 }
 0x19d   :  { %v430_v33 = vadd.f32 %v989_v11, %v429_v32  ;;  %1157 = vmatprep.mubr.msk.f32.mxu0 %vm284_vm2, %v482_v29  ;;  %v485_v36 = vmax.f32 %v435_v31, 0.0 }
 0x19e   :  { %v1133_v34 = vpop.f32.mrf.mxu1  ;;  %1158 = vmatmul.mubr.msk.f32.gmra.mxu0 %vm284_vm2, %v483_v30 }
 0x19f   :  { %v484_v35 = vmax.f32 %v430_v33, 0.0  ;;  %v445_v37 = vadd.f32 %v1133_v34, %v989_v11 }
 0x1a0   :  { %v439_v38 = vpop.f32.mrf.mxu1 }
 0x1a1   :  { %v440_v39 = vadd.f32 %v989_v11, %v439_v38  ;;  %1160 = vmatprep.mubr.msk.f32.mxu0 %vm284_vm2, %v484_v35  ;;  %v487_v42 = vmax.f32 %v445_v37, 0.0 }
 0x1a2   :  { %v1136_v40 = vpop.f32.mrf.mxu1  ;;  %1161 = vmatmul.mubr.msk.f32.gmra.mxu0 %vm284_vm2, %v485_v36 }
 0x1a3   :  { %v486_v41 = vmax.f32 %v440_v39, 0.0  ;;  %v455_v43 = vadd.f32 %v1136_v40, %v989_v11 }
 0x1a4   :  { %v449_v44 = vpop.f32.mrf.mxu1 }
 0x1a5   :  { %v450_v45 = vadd.f32 %v989_v11, %v449_v44  ;;  %1163 = vmatprep.mubr.msk.f32.mxu0 %vm284_vm2, %v486_v41  ;;  %v489_v48 = vmax.f32 %v455_v43, 0.0 }
 0x1a6   :  { %v1139_v46 = vpop.f32.mrf.mxu1  ;;  %1164 = vmatmul.mubr.msk.f32.gmra.mxu0 %vm284_vm2, %v487_v42 }
 0x1a7   :  { %v488_v47 = vmax.f32 %v450_v45, 0.0  ;;  %v465_v49 = vadd.f32 %v1139_v46, %v989_v11 }
 0x1a8   :  { %v459_v50 = vpop.f32.mrf.mxu1 }
 0x1a9   :  { %v460_v51 = vadd.f32 %v989_v11, %v459_v50  ;;  %1166 = vmatprep.mubr.msk.f32.mxu0 %vm284_vm2, %v488_v47  ;;  %v491_v54 = vmax.f32 %v465_v49, 0.0 }
 0x1aa   :  { %v1142_v52 = vpop.f32.mrf.mxu1  ;;  %1167 = vmatmul.mubr.msk.f32.gmra.mxu0 %vm284_vm2, %v489_v48 }
 0x1ab   :  { %v490_v53 = vmax.f32 %v460_v51, 0.0  ;;  %v475_v55 = vadd.f32 %v1142_v52, %v989_v11 }
 0x1ac   :  { %v469_v56 = vpop.f32.mrf.mxu1 }
 0x1ad   :  { %v470_v57 = vadd.f32 %v989_v11, %v469_v56  ;;  %1169 = vmatprep.mubr.msk.f32.mxu0 %vm284_vm2, %v490_v53  ;;  %v493_v59 = vmax.f32 %v475_v55, 0.0 }
 0x1ae   :  { %1170 = vmatmul.mubr.msk.f32.gmra.mxu0 %vm284_vm2, %v491_v54 }
 0x1af   :  { %v492_v58 = vmax.f32 %v470_v57, 0.0 }
 0x1b1   :  { %1172 = vmatprep.mubr.msk.f32.mxu0 %vm284_vm2, %v492_v58 }
 0x1b2   :  { %1173 = vmatmul.mubr.msk.f32.gmra.mxu0 %vm284_vm2, %v493_v59 }
 0x256   :  { %v1153_v61 = vpop.f32.mrf.mxu0 }
 0x257   :  { %v1396_v62 = vadd.f32 %v1153_v61, %v1006_v60 }
 0x258   :  { %v619_v63 = vpop.f32.mrf.mxu0 }
 0x259   :  { %v1398_v0 = vadd.f32 %v1006_v60, %v619_v63  ;;  %v701_v1 = vsel %vm284_vm2, %v1396_v62, 0.0 }
 0x25a   :  { %702 = vadd.xlane.f32.xlu0 %v701_v1  ;;  %v1156_v2 = vpop.f32.mrf.mxu0 }
 0x25b   :  { %v1402_v3 = vadd.f32 %v1156_v2, %v1006_v60  ;;  %v698_v7 = vsel %vm284_vm2, %v1398_v0, 0.0 }
 0x25c   :  { %v629_v4 = vpop.f32.mrf.mxu0 }
 0x25d   :  { %v1404_v5 = vadd.f32 %v1006_v60, %v629_v4  ;;  %v707_v6 = vsel %vm284_vm2, %v1402_v3, 0.0 }
 0x25e   :  { %708 = vadd.xlane.f32.xlu1 %v707_v6  ;;  %v1159_v8 = vpop.f32.mrf.mxu0  ;;  %699 = vadd.xlane.f32.xlu0 %v698_v7 }
 0x25f   :  { %v1410_v10 = vadd.f32 %v1159_v8, %v1006_v60  ;;  %v704_v12 = vsel %vm284_vm2, %v1404_v5, 0.0 }
 0x260   :  { %v639_v9 = vpop.f32.mrf.mxu0 }
 0x261   :  { %v1412_v11 = vadd.f32 %v1006_v60, %v639_v9  ;;  %v713_v18 = vsel %vm284_vm2, %v1410_v10, 0.0 }
 0x262   :  { %v1162_v13 = vpop.f32.mrf.mxu0  ;;  %705 = vadd.xlane.f32.xlu1 %v704_v12 }
 0x263   :  { %v710_v14 = vsel %vm284_vm2, %v1412_v11, 0.0  ;;  %v1418_v16 = vadd.f32 %v1162_v13, %v1006_v60 }
 0x264   :  { %v649_v15 = vpop.f32.mrf.mxu0  ;;  %711 = vadd.xlane.f32.xlu0 %v710_v14 }
 0x265   :  { %v1420_v17 = vadd.f32 %v1006_v60, %v649_v15  ;;  %v719_v24 = vsel %vm284_vm2, %v1418_v16, 0.0 }
 0x266   :  { %v1165_v19 = vpop.f32.mrf.mxu0  ;;  %714 = vadd.xlane.f32.xlu1 %v713_v18 }
 0x267   :  { %v716_v20 = vsel %vm284_vm2, %v1420_v17, 0.0  ;;  %v1426_v22 = vadd.f32 %v1165_v19, %v1006_v60 }
 0x268   :  { %v659_v21 = vpop.f32.mrf.mxu0  ;;  %717 = vadd.xlane.f32.xlu0 %v716_v20 }
 0x269   :  { %v1428_v23 = vadd.f32 %v1006_v60, %v659_v21  ;;  %v725_v30 = vsel %vm284_vm2, %v1426_v22, 0.0 }
 0x26a   :  { %v1168_v25 = vpop.f32.mrf.mxu0  ;;  %720 = vadd.xlane.f32.xlu1 %v719_v24 }
 0x26b   :  { %v722_v26 = vsel %vm284_vm2, %v1428_v23, 0.0  ;;  %v1434_v28 = vadd.f32 %v1168_v25, %v1006_v60 }
 0x26c   :  { %v669_v27 = vpop.f32.mrf.mxu0  ;;  %723 = vadd.xlane.f32.xlu0 %v722_v26 }
 0x26d   :  { %v1436_v29 = vadd.f32 %v1006_v60, %v669_v27  ;;  %v731_v36 = vsel %vm284_vm2, %v1434_v28, 0.0 }
 0x26e   :  { %v1171_v31 = vpop.f32.mrf.mxu0  ;;  %726 = vadd.xlane.f32.xlu1 %v725_v30 }
 0x26f   :  { %v728_v32 = vsel %vm284_vm2, %v1436_v29, 0.0  ;;  %v1442_v34 = vadd.f32 %v1171_v31, %v1006_v60 }
 0x270   :  { %v679_v33 = vpop.f32.mrf.mxu0  ;;  %729 = vadd.xlane.f32.xlu0 %v728_v32 }
 0x271   :  { %v1444_v35 = vadd.f32 %v1006_v60, %v679_v33  ;;  %v737_v42 = vsel %vm284_vm2, %v1442_v34, 0.0 }
 0x272   :  { %v1174_v37 = vpop.f32.mrf.mxu0  ;;  %732 = vadd.xlane.f32.xlu1 %v731_v36 }
 0x273   :  { %v734_v38 = vsel %vm284_vm2, %v1444_v35, 0.0  ;;  %v1450_v40 = vadd.f32 %v1174_v37, %v1006_v60 }
 0x274   :  { %v689_v39 = vpop.f32.mrf.mxu0  ;;  %735 = vadd.xlane.f32.xlu0 %v734_v38 }
 0x275   :  { %v1452_v41 = vadd.f32 %v1006_v60, %v689_v39  ;;  %v743_v44 = vsel %vm284_vm2, %v1450_v40, 0.0 }
 0x276   :  { %738 = vadd.xlane.f32.xlu1 %v737_v42 }
 0x277   :  { %v740_v43 = vsel %vm284_vm2, %v1452_v41, 0.0 }
 0x278   :  { %741 = vadd.xlane.f32.xlu0 %v740_v43 }
 0x27a   :  { %744 = vadd.xlane.f32.xlu1 %v743_v44 }
 0x2e3   :  { %v703_v45 = vpop.xlane.xlu0 %702 }
 0x2e4   :  { %v748_v46 = vmul.f32 0.03125, %v703_v45 }
 0x2e6   :  { %v1461_v47 = vsub.f32 %v1396_v62, %v748_v46 }
 0x2e7   :  { %v709_v48 = vpop.xlane.xlu1 %708  ;;  %v700_v49 = vpop.xlane.xlu0 %699 }
 0x2e8   :  { %v750_v50 = vmul.f32 0.03125, %v709_v48  ;;  %v747_v51 = vmul.f32 0.03125, %v700_v49  ;;  %v780_v52 = vmul.f32 %v1461_v47, %v1461_v47 }
 0x2ea   :  { %v1466_v53 = vsub.f32 %v1402_v3, %v750_v50  ;;  %v1469_v54 = vsub.f32 %v1398_v0, %v747_v51  ;;  %v798_v55 = vsel %vm284_vm2, %v780_v52, 0.0 }
 0x2eb   :  { %799 = vadd.xlane.f32.xlu1 %v798_v55  ;;  %v706_v56 = vpop.xlane.xlu1 %705 }
 0x2ec   :  { %v749_v57 = vmul.f32 0.03125, %v706_v56  ;;  %v782_v58 = vmul.f32 %v1466_v53, %v1466_v53  ;;  %v779_v59 = vmul.f32 %v1469_v54, %v1469_v54 }
 0x2ed   :  { %v712_v60 = vpop.xlane.xlu0 %711 }
 0x2ee   :  { %v1477_v61 = vsub.f32 %v1404_v5, %v749_v57  ;;  %v751_v62 = vmul.f32 0.03125, %v712_v60  ;;  %v804_v63 = vsel %vm284_vm2, %v782_v58, 0.0  ;;  %v795_v0 = vsel %vm284_vm2, %v779_v59, 0.0 }
 0x2ef   :  { %805 = vadd.xlane.f32.xlu1 %v804_v63  ;;  %v715_v1 = vpop.xlane.xlu1 %714  ;;  %796 = vadd.xlane.f32.xlu0 %v795_v0 }
 0x2f0   :  { %v1482_v2 = vsub.f32 %v1412_v11, %v751_v62  ;;  %v752_v3 = vmul.f32 0.03125, %v715_v1  ;;  %v781_v4 = vmul.f32 %v1477_v61, %v1477_v61 }
 0x2f1   :  { %v718_v6 = vpop.xlane.xlu0 %717 }
 0x2f2   :  { %v1487_v7 = vsub.f32 %v1410_v10, %v752_v3  ;;  %v753_v5 = vmul.f32 0.03125, %v718_v6  ;;  %v801_v8 = vsel %vm284_vm2, %v781_v4, 0.0  ;;  %v783_v9 = vmul.f32 %v1482_v2, %v1482_v2 }
 0x2f3   :  { %v721_v12 = vpop.xlane.xlu1 %720  ;;  %802 = vadd.xlane.f32.xlu0 %v801_v8 }
 0x2f4   :  { %v1493_v13 = vsub.f32 %v1420_v17, %v753_v5  ;;  %v754_v11 = vmul.f32 0.03125, %v721_v12  ;;  %v784_v14 = vmul.f32 %v1487_v7, %v1487_v7  ;;  %v807_v18 = vsel %vm284_vm2, %v783_v9, 0.0 }
 0x2f5   :  { %v724_v15 = vpop.xlane.xlu0 %723 }
 0x2f6   :  { %v1499_v10 = vsub.f32 %v1418_v16, %v754_v11  ;;  %v755_v19 = vmul.f32 0.03125, %v724_v15  ;;  %v810_v20 = vsel %vm284_vm2, %v784_v14, 0.0  ;;  %v785_v21 = vmul.f32 %v1493_v13, %v1493_v13 }
 0x2f7   :  { %811 = vadd.xlane.f32.xlu1 %v810_v20  ;;  %v727_v24 = vpop.xlane.xlu1 %726  ;;  %808 = vadd.xlane.f32.xlu0 %v807_v18 }
 0x2f8   :  { %v1505_v17 = vsub.f32 %v1428_v23, %v755_v19  ;;  %v756_v25 = vmul.f32 0.03125, %v727_v24  ;;  %v786_v26 = vmul.f32 %v1499_v10, %v1499_v10  ;;  %v813_v16 = vsel %vm284_vm2, %v785_v21, 0.0 }
 0x2f9   :  { %v730_v27 = vpop.xlane.xlu0 %729 }
 0x2fa   :  { %v1511_v30 = vsub.f32 %v1426_v22, %v756_v25  ;;  %v757_v31 = vmul.f32 0.03125, %v730_v27  ;;  %v816_v32 = vsel %vm284_vm2, %v786_v26, 0.0  ;;  %v787_v33 = vmul.f32 %v1505_v17, %v1505_v17 }
 0x2fb   :  { %817 = vadd.xlane.f32.xlu1 %v816_v32  ;;  %v733_v36 = vpop.xlane.xlu1 %732  ;;  %814 = vadd.xlane.f32.xlu0 %v813_v16 }
 0x2fc   :  { %v1517_v23 = vsub.f32 %v1436_v29, %v757_v31  ;;  %v758_v37 = vmul.f32 0.03125, %v733_v36  ;;  %v788_v38 = vmul.f32 %v1511_v30, %v1511_v30  ;;  %v819_v22 = vsel %vm284_vm2, %v787_v33, 0.0  ;;  %v1559_v36 = vld [vmem:[%s1685_s7] ss:$0 sm:$0xff] }
 0x2fd   :  { %v736_v39 = vpop.xlane.xlu0 %735 }
 0x2fe   :  { %v1523_v42 = vsub.f32 %v1434_v28, %v758_v37  ;;  %v759_v43 = vmul.f32 0.03125, %v736_v39  ;;  %v822_v44 = vsel %vm284_vm2, %v788_v38, 0.0  ;;  %v789_v45 = vmul.f32 %v1517_v23, %v1517_v23 }
 0x2ff   :  { %823 = vadd.xlane.f32.xlu1 %v822_v44  ;;  %v739_v46 = vpop.xlane.xlu1 %738  ;;  %820 = vadd.xlane.f32.xlu0 %v819_v22  ;;  %v1565_v22 = vld [vmem:[%s1686_s8] ss:$0 sm:$0xff] }
 0x300   :  { %v1529_v29 = vsub.f32 %v1444_v35, %v759_v43  ;;  %v760_v48 = vmul.f32 0.03125, %v739_v46  ;;  %v790_v49 = vmul.f32 %v1523_v42, %v1523_v42  ;;  %v825_v28 = vsel %vm284_vm2, %v789_v45, 0.0 }
 0x301   :  { %v742_v50 = vpop.xlane.xlu0 %741 }
 0x302   :  { %v1535_v51 = vsub.f32 %v1442_v34, %v760_v48  ;;  %v761_v52 = vmul.f32 0.03125, %v742_v50  ;;  %v828_v55 = vsel %vm284_vm2, %v790_v49, 0.0  ;;  %v791_v56 = vmul.f32 %v1529_v29, %v1529_v29 }
 0x303   :  { %829 = vadd.xlane.f32.xlu1 %v828_v55  ;;  %v745_v57 = vpop.xlane.xlu1 %744  ;;  %826 = vadd.xlane.f32.xlu0 %v825_v28 }
 0x304   :  { %v1541_v35 = vsub.f32 %v1452_v41, %v761_v52  ;;  %v762_v58 = vmul.f32 0.03125, %v745_v57  ;;  %v792_v59 = vmul.f32 %v1535_v51, %v1535_v51  ;;  %v831_v62 = vsel %vm284_vm2, %v791_v56, 0.0 }
 0x306   :  { %v1546_v60 = vsub.f32 %v1450_v40, %v762_v58  ;;  %v834_v34 = vsel %vm284_vm2, %v792_v59, 0.0  ;;  %v793_v63 = vmul.f32 %v1541_v35, %v1541_v35 }
 0x307   :  { %835 = vadd.xlane.f32.xlu1 %v834_v34  ;;  %832 = vadd.xlane.f32.xlu0 %v831_v62 }
 0x308   :  { %v794_v41 = vmul.f32 %v1546_v60, %v1546_v60  ;;  %v837_v1 = vsel %vm284_vm2, %v793_v63, 0.0 }
 0x30a   :  { %v840_v0 = vsel %vm284_vm2, %v794_v41, 0.0 }
 0x30b   :  { %841 = vadd.xlane.f32.xlu1 %v840_v0  ;;  %838 = vadd.xlane.f32.xlu0 %v837_v1 }
 0x374   :  { %v800_v40 = vpop.xlane.xlu1 %799 }
 0x375   :  { %v844_v3 = vmul.f32 0.03125, %v800_v40 }
 0x377   :  { %v860_v4 = vadd.f32 1e-05, %v844_v3 }
 0x378   :  { %v806_v6 = vpop.xlane.xlu1 %805  ;;  %v797_v5 = vpop.xlane.xlu0 %796 }
 0x379   :  { %1179 = vrsqrt.f32 %v860_v4  ;;  %v846_v8 = vmul.f32 0.03125, %v806_v6  ;;  %v843_v9 = vmul.f32 0.03125, %v797_v5 }
 0x37b   :  { %v862_v12 = vadd.f32 1e-05, %v846_v8  ;;  %v859_v11 = vadd.f32 1e-05, %v843_v9 }
 0x37c   :  { %v803_v14 = vpop.xlane.xlu0 %802 }
 0x37d   :  { %1181 = vrsqrt.f32 %v862_v12  ;;  %v845_v15 = vmul.f32 0.03125, %v803_v14 }
 0x37e   :  { %1183 = vrsqrt.f32 %v859_v11 }
 0x37f   :  { %v861_v18 = vadd.f32 1e-05, %v845_v15 }
 0x380   :  { %v812_v19 = vpop.xlane.xlu1 %811  ;;  %v809_v20 = vpop.xlane.xlu0 %808 }
 0x381   :  { %1185 = vrsqrt.f32 %v861_v18  ;;  %v848_v21 = vmul.f32 0.03125, %v812_v19  ;;  %v847_v24 = vmul.f32 0.03125, %v809_v20 }
 0x383   :  { %v864_v25 = vadd.f32 1e-05, %v848_v21  ;;  %v863_v26 = vadd.f32 1e-05, %v847_v24 }
 0x384   :  { %v818_v27 = vpop.xlane.xlu1 %817  ;;  %v815_v16 = vpop.xlane.xlu0 %814 }
 0x385   :  { %1187 = vrsqrt.f32 %v864_v25  ;;  %v850_v31 = vmul.f32 0.03125, %v818_v27  ;;  %v849_v32 = vmul.f32 0.03125, %v815_v16 }
 0x386   :  { %v1180_v33 = vpop.eup %1179  ;;  %1189 = vrsqrt.f32 %v863_v26 }
 0x387   :  { %v892_v37 = vmul.f32 %v1180_v33, %v1461_v47  ;;  %v866_v38 = vadd.f32 1e-05, %v850_v31  ;;  %v865_v39 = vadd.f32 1e-05, %v849_v32 }
 0x388   :  { %v824_v43 = vpop.xlane.xlu1 %823  ;;  %v821_v44 = vpop.xlane.xlu0 %820 }
 0x389   :  { %v914_v45 = vmul.f32 %v1559_v36, %v892_v37  ;;  %1191 = vrsqrt.f32 %v866_v38  ;;  %v852_v46 = vmul.f32 0.03125, %v824_v43  ;;  %v851_v48 = vmul.f32 0.03125, %v821_v44 }
 0x38a   :  { %v1182_v49 = vpop.eup %1181  ;;  %1193 = vrsqrt.f32 %v865_v39 }
 0x38b   :  { %v1184_v50 = vpop.eup %1183  ;;  %v936_v28 = vadd.f32 %v1565_v22, %v914_v45  ;;  %v894_v47 = vmul.f32 %v1182_v49, %v1466_v53  ;;  %v868_v52 = vadd.f32 1e-05, %v852_v46  ;;  %v867_v55 = vadd.f32 1e-05, %v851_v48 }
 0x38c   :  { %v891_v56 = vmul.f32 %v1184_v50, %v1469_v54  ;;  %v830_v57 = vpop.xlane.xlu1 %829  ;;  %v827_v58 = vpop.xlane.xlu0 %826 }
 0x38d   :  { %952 = vst.msk [vmem:[%s1687_s9 + $0x8] sm:$0xff] %vm284_vm2, %v936_v28  ;;  %v916_v59 = vmul.f32 %v1559_v36, %v894_v47  ;;  %1195 = vrsqrt.f32 %v868_v52  ;;  %v854_v34 = vmul.f32 0.03125, %v830_v57  ;;  %v853_v62 = vmul.f32 0.03125, %v827_v58 }
 0x38e   :  { %v1186_v63 = vpop.eup %1185  ;;  %v913_v41 = vmul.f32 %v1559_v36, %v891_v56  ;;  %1197 = vrsqrt.f32 %v867_v55 }
 0x38f   :  { %v938_v53 = vadd.f32 %v1565_v22, %v916_v59  ;;  %v893_v54 = vmul.f32 %v1186_v63, %v1477_v61  ;;  %v870_v0 = vadd.f32 1e-05, %v854_v34  ;;  %v869_v1 = vadd.f32 1e-05, %v853_v62 }
 0x390   :  { %v935_v40 = vadd.f32 %v1565_v22, %v913_v41  ;;  %v836_v3 = vpop.xlane.xlu1 %835  ;;  %v833_v4 = vpop.xlane.xlu0 %832 }
 0x391   :  { %954 = vst.msk [vmem:[%s1687_s9 + $0x18] sm:$0xff] %vm284_vm2, %v938_v53  ;;  %v915_v6 = vmul.f32 %v1559_v36, %v893_v54  ;;  %1199 = vrsqrt.f32 %v870_v0  ;;  %v856_v5 = vmul.f32 0.03125, %v836_v3  ;;  %v855_v8 = vmul.f32 0.03125, %v833_v4 }
 0x392   :  { %v1188_v9 = vpop.eup %1187  ;;  %951 = vst.msk [vmem:[%s1687_s9] sm:$0xff] %vm284_vm2, %v935_v40  ;;  %1201 = vrsqrt.f32 %v869_v1 }
 0x393   :  { %v1190_v61 = vpop.eup %1189  ;;  %v937_v12 = vadd.f32 %v1565_v22, %v915_v6  ;;  %v896_v11 = vmul.f32 %v1188_v9, %v1487_v7  ;;  %v872_v14 = vadd.f32 1e-05, %v856_v5  ;;  %v871_v15 = vadd.f32 1e-05, %v855_v8 }
 0x394   :  { %v895_v18 = vmul.f32 %v1190_v61, %v1482_v2  ;;  %v842_v19 = vpop.xlane.xlu1 %841  ;;  %v839_v20 = vpop.xlane.xlu0 %838 }
 0x395   :  { %953 = vst.msk [vmem:[%s1687_s9 + $0x10] sm:$0xff] %vm284_vm2, %v937_v12  ;;  %v918_v21 = vmul.f32 %v1559_v36, %v896_v11  ;;  %1203 = vrsqrt.f32 %v872_v14  ;;  %v858_v24 = vmul.f32 0.03125, %v842_v19  ;;  %v857_v25 = vmul.f32 0.03125, %v839_v20 }
 0x396   :  { %v1192_v26 = vpop.eup %1191  ;;  %v917_v27 = vmul.f32 %v1559_v36, %v895_v18  ;;  %1205 = vrsqrt.f32 %v871_v15 }
 0x397   :  { %v1194_v7 = vpop.eup %1193  ;;  %v940_v16 = vadd.f32 %v1565_v22, %v918_v21  ;;  %v898_v2 = vmul.f32 %v1192_v26, %v1499_v10  ;;  %v874_v31 = vadd.f32 1e-05, %v858_v24  ;;  %v873_v32 = vadd.f32 1e-05, %v857_v25 }
 0x398   :  { %v939_v33 = vadd.f32 %v1565_v22, %v917_v27  ;;  %v897_v37 = vmul.f32 %v1194_v7, %v1493_v13 }
 0x399   :  { %956 = vst.msk [vmem:[%s1687_s9 + $0x28] sm:$0xff] %vm284_vm2, %v940_v16  ;;  %v920_v38 = vmul.f32 %v1559_v36, %v898_v2  ;;  %1207 = vrsqrt.f32 %v874_v31 }
 0x39a   :  { %v1196_v39 = vpop.eup %1195  ;;  %955 = vst.msk [vmem:[%s1687_s9 + $0x20] sm:$0xff] %vm284_vm2, %v939_v33  ;;  %v919_v10 = vmul.f32 %v1559_v36, %v897_v37  ;;  %1209 = vrsqrt.f32 %v873_v32 }
 0x39b   :  { %v1198_v43 = vpop.eup %1197  ;;  %v942_v13 = vadd.f32 %v1565_v22, %v920_v38  ;;  %v900_v44 = vmul.f32 %v1196_v39, %v1511_v30 }
 0x39c   :  { %v941_v45 = vadd.f32 %v1565_v22, %v919_v10  ;;  %v899_v46 = vmul.f32 %v1198_v43, %v1505_v17 }
 0x39d   :  { %958 = vst.msk [vmem:[%s1687_s9 + $0x38] sm:$0xff] %vm284_vm2, %v942_v13  ;;  %v922_v48 = vmul.f32 %v1559_v36, %v900_v44 }
 0x39e   :  { %v1200_v49 = vpop.eup %1199  ;;  %957 = vst.msk [vmem:[%s1687_s9 + $0x30] sm:$0xff] %vm284_vm2, %v941_v45  ;;  %v921_v50 = vmul.f32 %v1559_v36, %v899_v46 }
 0x39f   :  { %v1202_v30 = vpop.eup %1201  ;;  %v944_v28 = vadd.f32 %v1565_v22, %v922_v48  ;;  %v902_v17 = vmul.f32 %v1200_v49, %v1523_v42 }
 0x3a0   :  { %v943_v47 = vadd.f32 %v1565_v22, %v921_v50  ;;  %v901_v52 = vmul.f32 %v1202_v30, %v1517_v23 }
 0x3a1   :  { %960 = vst.msk [vmem:[%s1687_s9 + $0x48] sm:$0xff] %vm284_vm2, %v944_v28  ;;  %v924_v55 = vmul.f32 %v1559_v36, %v902_v17 }
 0x3a2   :  { %v1204_v56 = vpop.eup %1203  ;;  %959 = vst.msk [vmem:[%s1687_s9 + $0x40] sm:$0xff] %vm284_vm2, %v943_v47  ;;  %v923_v57 = vmul.f32 %v1559_v36, %v901_v52 }
 0x3a3   :  { %v1206_v42 = vpop.eup %1205  ;;  %v946_v58 = vadd.f32 %v1565_v22, %v924_v55  ;;  %v904_v23 = vmul.f32 %v1204_v56, %v1535_v51 }
 0x3a4   :  { %v945_v59 = vadd.f32 %v1565_v22, %v923_v57  ;;  %v903_v34 = vmul.f32 %v1206_v42, %v1529_v29 }
 0x3a5   :  { %962 = vst.msk [vmem:[%s1687_s9 + $0x58] sm:$0xff] %vm284_vm2, %v946_v58  ;;  %v926_v62 = vmul.f32 %v1559_v36, %v904_v23 }
 0x3a6   :  { %v1208_v63 = vpop.eup %1207  ;;  %961 = vst.msk [vmem:[%s1687_s9 + $0x50] sm:$0xff] %vm284_vm2, %v945_v59  ;;  %v925_v41 = vmul.f32 %v1559_v36, %v903_v34 }
 0x3a7   :  { %v1210_v51 = vpop.eup %1209  ;;  %v948_v53 = vadd.f32 %v1565_v22, %v926_v62  ;;  %v906_v29 = vmul.f32 %v1208_v63, %v1546_v60 }
 0x3a8   :  { %v947_v54 = vadd.f32 %v1565_v22, %v925_v41  ;;  %v905_v0 = vmul.f32 %v1210_v51, %v1541_v35 }
 0x3a9   :  { %964 = vst.msk [vmem:[%s1687_s9 + $0x68] sm:$0xff] %vm284_vm2, %v948_v53  ;;  %v928_v1 = vmul.f32 %v1559_v36, %v906_v29 }
 0x3aa   :  { %963 = vst.msk [vmem:[%s1687_s9 + $0x60] sm:$0xff] %vm284_vm2, %v947_v54  ;;  %v927_v40 = vmul.f32 %v1559_v36, %v905_v0 }
 0x3ab   :  { %v950_v60 = vadd.f32 %v1565_v22, %v928_v1 }
 0x3ac   :  { %v949_v3 = vadd.f32 %v1565_v22, %v927_v40 }
 0x3ad   :  { %966 = vst.msk [vmem:[%s1687_s9 + $0x78] sm:$0xff] %vm284_vm2, %v950_v60 }
 0x3ae   :  { %965 = vst.msk [vmem:[%s1687_s9 + $0x70] sm:$0xff] %vm284_vm2, %v949_v3 }

</bundles_post_ra>
